<compile_context>
chip_gen: v6e
topology: v6e:2x2x1
jax: 0.10.0
libtpu: 0.0.40
codegen_flags: <defaults>
</compile_context>

<pallas_src>
import functools

import jax
import jax.numpy as jnp
import numpy as np
from jax.experimental import pallas as pl
from jax.experimental.pallas import tpu as pltpu

_F32 = jnp.float32
_BF16 = jnp.bfloat16
_LN_EPS = 1e-5


def _layer_norm(v, g, b):
    # Two-pass stats (mean, centered variance): avoids E[x^2]-E[x]^2 cancellation.
    mu = jnp.mean(v, axis=-1, keepdims=True)
    c = v - mu
    var = jnp.mean(c * c, axis=-1, keepdims=True)
    return c * jax.lax.rsqrt(var + _LN_EPS) * g + b


# --------------------------------------------------------------------------
# Kernel 1: LN1 + Q/K/V projections (once per token, full MXU width)
# --------------------------------------------------------------------------
def _ln_qkv_kernel(x_ref, g1_ref, b1_ref, wq_ref, wk_ref, wv_ref,
                   q_ref, k_ref, v_ref, *, scale):
    xn = _layer_norm(x_ref[0], g1_ref[0], b1_ref[0]).astype(_BF16)     # (TR, E)
    q = jnp.dot(xn, wq_ref[...], preferred_element_type=_F32) * scale  # scale folded in
    q_ref[0] = q.astype(_BF16)
    k_ref[0] = jnp.dot(xn, wk_ref[...], preferred_element_type=_F32).astype(_BF16)
    v_ref[0] = jnp.dot(xn, wv_ref[...], preferred_element_type=_F32).astype(_BF16)


# --------------------------------------------------------------------------
# Kernel 2: flash (online-softmax) attention + fc_out + residual 1
# grid = (batch, q-row tiles, kv tiles)  -- kv is the reduction axis
# --------------------------------------------------------------------------
def _flash_attn_kernel(q_ref, k_ref, v_ref, x_ref, wo_ref, bo_ref, o_ref,
                       m_ref, l_ref, acc_ref,
                       *, heads, head_dim, seq_len, padded_len):
    kv = pl.program_id(2)

    @pl.when(kv == 0)
    def _():
        m_ref[...] = jnp.full_like(m_ref, -1e30)
        l_ref[...] = jnp.zeros_like(l_ref)
        acc_ref[...] = jnp.zeros_like(acc_ref)

    q = q_ref[0]          # (TQ,  E) bf16, E^-0.5 already folded in
    k = k_ref[0]          # (TKV, E) bf16
    v = v_ref[0]          # (TKV, E) bf16
    tq, tkv = q.shape[0], k.shape[0]

    if padded_len != seq_len:   # static gate: mask padded kv rows
        kv_ids = kv * tkv + jax.lax.broadcasted_iota(jnp.int32, (tq, tkv), 1)
        valid = kv_ids < seq_len
    else:
        valid = None

    d = head_dim
    for h in range(heads):   # static unroll; per-head temporaries are short-lived
        qh = q[:, h * d:(h + 1) * d]
        kh = k[:, h * d:(h + 1) * d]
        vh = v[:, h * d:(h + 1) * d]
        # (TQ,d) x (TKV,d) contracting d  ->  (TQ, TKV) scores, f32
        s = jax.lax.dot_general(qh, kh, (((1,), (1,)), ((), ())),
                                preferred_element_type=_F32)
        if valid is not None:
            s = jnp.where(valid, s, -1e30)
        m_prev = m_ref[h]
        m_new = jnp.maximum(m_prev, jnp.max(s, axis=-1, keepdims=True))
        alpha = jnp.exp(m_prev - m_new)
        p = jnp.exp(s - m_new)                       # f32 exp (v5e-safe)
        l_ref[h] = alpha * l_ref[h] + jnp.sum(p, axis=-1, keepdims=True)
        acc_ref[h] = alpha * acc_ref[h] + jnp.dot(
            p.astype(_BF16), vh, preferred_element_type=_F32)
        m_ref[h] = m_new

    @pl.when(kv == pl.num_programs(2) - 1)
    def _():
        o_heads = []
        for h in range(heads):
            inv_l = pl.reciprocal(l_ref[h], approx=True)   # EUP, off the VALU path
            o_heads.append((acc_ref[h] * inv_l).astype(_BF16))
        o_cat = jnp.concatenate(o_heads, axis=-1)          # (TQ, E) bf16
        attn = jnp.dot(o_cat, wo_ref[...], preferred_element_type=_F32)
        o_ref[0] = attn + bo_ref[0] + x_ref[0]             # residual 1


# --------------------------------------------------------------------------
# Kernel 3: LN2 + FFN (hidden dim tiled) + residual 2
# grid = (batch, row tiles, H chunks)  -- H chunk is the reduction axis
# --------------------------------------------------------------------------
def _ffn_kernel(x1_ref, g2_ref, b2_ref, w1_ref, bf1_ref, w2_ref, bf2_ref,
                o_ref, xn2_ref, yacc_ref):
    hc = pl.program_id(2)

    @pl.when(hc == 0)
    def _():
        xn2_ref[...] = _layer_norm(x1_ref[0], g2_ref[0], b2_ref[0]).astype(_BF16)
        yacc_ref[...] = jnp.zeros_like(yacc_ref)

    hid = jnp.dot(xn2_ref[...], w1_ref[...], preferred_element_type=_F32) + bf1_ref[0]
    hid = jnp.maximum(hid, 0.0).astype(_BF16)
    yacc_ref[...] += jnp.dot(hid, w2_ref[...], preferred_element_type=_F32)

    @pl.when(hc == pl.num_programs(2) - 1)
    def _():
        o_ref[0] = yacc_ref[...] + bf2_ref[0] + x1_ref[0]   # residual 2


# --------------------------------------------------------------------------
# Wrapper
# --------------------------------------------------------------------------
def _round_up(a, m):
    return (a + m - 1) // m * m


def _pick_row_tile(L, target):
    return target if L >= target else _round_up(L, 8)


def _pick_h_tile(H, target=512):
    if H <= target:
        return H
    for t in range(target, 127, -128):
        if H % t == 0:
            return t
    return H


def _vmem_limit_bytes():
    # ~3/4 of physical VMEM, capped at 100 MiB (v5e/v6e: 128 MiB, v7x: 64 MiB).
    try:
        cap = int(pltpu.get_tpu_info().vmem_capacity_bytes)
    except Exception:
        cap = 64 * 1024 * 1024
    return max(32 * 1024 * 1024, min(cap * 3 // 4, 100 * 1024 * 1024))


def _const_spec(shape, single_buffer=True):
    """BlockSpec for an input whose block index never changes (weights/biases).
    Single-buffered when supported: a 2nd pipeline buffer is pure VMEM waste."""
    zero = tuple(0 for _ in shape)
    idx = lambda *_: zero
    if single_buffer:
        try:
            return pl.BlockSpec(shape, idx, pipeline_mode=pl.Buffered(1))
        except Exception:
            pass
    return pl.BlockSpec(shape, idx)


def transformer_block(x, params, *, heads, q_tile=256, h_tile=512,
                      single_buffer_weights=True):
    """x: (N, L, E) float32. params: dict (MXU weights bf16, biases/LN f32)."""
    N, L, E = x.shape
    assert E % heads == 0, "embedding_size must be divisible by heads"
    d = E // heads
    H = params["w1"].shape[1]

    TQ = _pick_row_tile(L, q_tile)      # q / row tile (multiple of 8)
    Lp = _round_up(L, TQ)               # padded seq length (kv rows masked)
    TKV = TQ
    TH = _pick_h_tile(H, h_tile)        # divides H by construction

    xp = x if Lp == L else jnp.pad(x, ((0, 0), (0, Lp - L), (0, 0)))

    scale = float(E) ** (-0.5)          # matches reference: embedding_size**-0.5
    vmem = _vmem_limit_bytes()
    sb = single_buffer_weights
    n_row, n_kv, n_h = Lp // TQ, Lp // TKV, H // TH

    # ---------------- K1: LN1 + Q/K/V projections ----------------
    qkv = pl.pallas_call(
        functools.partial(_ln_qkv_kernel, scale=scale),
        out_shape=(jax.ShapeDtypeStruct((N, Lp, E), _BF16),
                   jax.ShapeDtypeStruct((N, Lp, E), _BF16),
                   jax.ShapeDtypeStruct((N, Lp, E), _BF16)),
        grid=(N, n_row),
        in_specs=[
            pl.BlockSpec((1, TQ, E), lambda n, t: (n, t, 0)),
            _const_spec((1, E), sb), _const_spec((1, E), sb),          # ln1 g/b
            _const_spec((E, E), sb), _const_spec((E, E), sb),          # wq, wk
            _const_spec((E, E), sb),                                   # wv
        ],
        out_specs=(pl.BlockSpec((1, TQ, E), lambda n, t: (n, t, 0)),
                   pl.BlockSpec((1, TQ, E), lambda n, t: (n, t, 0)),
                   pl.BlockSpec((1, TQ, E), lambda n, t: (n, t, 0))),
        compiler_params=pltpu.CompilerParams(
            dimension_semantics=("parallel", "parallel"),
            vmem_limit_bytes=vmem),
        cost_estimate=pl.CostEstimate(
            flops=6 * N * Lp * E * E,
            transcendentals=N * Lp,
            bytes_accessed=N * Lp * E * 4 + 3 * N * Lp * E * 2 + 3 * E * E * 2),
    )
    q, k, v = qkv(xp, params["g1"], params["b1"],
                  params["wq"], params["wk"], params["wv"])

    # ---------------- K2: flash attention + fc_out + residual 1 ----------------
    x1 = pl.pallas_call(
        functools.partial(_flash_attn_kernel, heads=heads, head_dim=d,
                          seq_len=L, padded_len=Lp),
        out_shape=jax.ShapeDtypeStruct((N, Lp, E), _F32),
        grid=(N, n_row, n_kv),
        in_specs=[
            pl.BlockSpec((1, TQ, E), lambda n, t, kv: (n, t, 0)),     # q tile
            pl.BlockSpec((1, TKV, E), lambda n, t, kv: (n, kv, 0)),   # k tile
            pl.BlockSpec((1, TKV, E), lambda n, t, kv: (n, kv, 0)),   # v tile
            pl.BlockSpec((1, TQ, E), lambda n, t, kv: (n, t, 0)),     # x (residual)
            _const_spec((E, E), sb),                                  # wo
            _const_spec((1, E), sb),                                  # bo
        ],
        out_specs=pl.BlockSpec((1, TQ, E), lambda n, t, kv: (n, t, 0)),
        scratch_shapes=[
            pltpu.VMEM((heads, TQ, 1), _F32),    # running max
            pltpu.VMEM((heads, TQ, 1), _F32),    # running denom
            pltpu.VMEM((heads, TQ, d), _F32),    # running PV accumulator
        ],
        compiler_params=pltpu.CompilerParams(
            dimension_semantics=("parallel", "parallel", "arbitrary"),
            vmem_limit_bytes=vmem),
        cost_estimate=pl.CostEstimate(
            flops=4 * N * Lp * Lp * E + 2 * N * Lp * E * E,
            transcendentals=N * heads * Lp * Lp,
            bytes_accessed=3 * N * Lp * E * 2 + 2 * N * Lp * E * 4 + E * E * 2),
    )(q, k, v, xp, params["wo"], params["bo"])

    # ---------------- K3: LN2 + FFN (H tiled) + residual 2 ----------------
    y = pl.pallas_call(
        _ffn_kernel,
        out_shape=jax.ShapeDtypeStruct((N, Lp, E), _F32),
        grid=(N, n_row, n_h),
        in_specs=[
            pl.BlockSpec((1, TQ, E), lambda n, t, h: (n, t, 0)),      # x1 tile
            _const_spec((1, E), sb), _const_spec((1, E), sb),         # ln2 g/b
            pl.BlockSpec((E, TH), lambda n, t, h: (0, h)),            # w1 chunk
            pl.BlockSpec((1, TH), lambda n, t, h: (0, h)),            # bf1 chunk
            pl.BlockSpec((TH, E), lambda n, t, h: (h, 0)),            # w2 chunk
            _const_spec((1, E), sb),                                  # bf2
        ],
        out_specs=pl.BlockSpec((1, TQ, E), lambda n, t, h: (n, t, 0)),
        scratch_shapes=[
            pltpu.VMEM((TQ, E), _BF16),      # LN2(x1), computed once per tile
            pltpu.VMEM((TQ, E), _F32),       # FFN output accumulator
        ],
        compiler_params=pltpu.CompilerParams(
            dimension_semantics=("parallel", "parallel", "arbitrary"),
            vmem_limit_bytes=vmem),
        cost_estimate=pl.CostEstimate(
            flops=4 * N * Lp * E * H,
            transcendentals=N * Lp,
            bytes_accessed=2 * N * Lp * E * 4 + 2 * E * H * 2),
    )(x1, params["g2"], params["b2"],
      params["w1"], params["bf1"], params["w2"], params["bf2"])

    return y if Lp == L else y[:, :L]


# --------------------------------------------------------------------------
# Pure-JAX f32 reference (mirror of the PyTorch TransformerBlock.forward, eval)
# --------------------------------------------------------------------------
def reference_forward(x, params, *, heads):
    N, L, E = x.shape
    d = E // heads
    f32 = jnp.float32
    wq = params["wq"].astype(f32)
    wk = params["wk"].astype(f32)
    wv = params["wv"].astype(f32)
    wo = params["wo"].astype(f32)
    w1 = params["w1"].astype(f32)
    w2 = params["w2"].astype(f32)

    def ln(v, g, b):
        mu = jnp.mean(v, axis=-1, keepdims=True)
        var = jnp.mean((v - mu) ** 2, axis=-1, keepdims=True)
        return (v - mu) * jax.lax.rsqrt(var + _LN_EPS) * g[0] + b[0]

    skip = x
    xn = ln(x, params["g1"], params["b1"])
    q = (xn @ wq).reshape(N, L, heads, d)
    k = (xn @ wk).reshape(N, L, heads, d)
    v = (xn @ wv).reshape(N, L, heads, d)
    qk = jnp.einsum("nqhd,nkhd->nhqk", q, k)
    attn = jax.nn.softmax(qk * (E ** -0.5), axis=3)
    out = jnp.einsum("nhqk,nkhd->nqhd", attn, v).reshape(N, L, E)
    out = out @ wo + params["bo"][0]
    x1 = out + skip
    xn2 = ln(x1, params["g2"], params["b2"])
    h = jax.nn.relu(xn2 @ w1 + params["bf1"][0])
    y = h @ w2 + params["bf2"][0]
    return y + x1


def init_params(key, embedding_size, heads, ffn_expansion):
    E = embedding_size
    H = E * ffn_expansion
    ks = jax.random.split(key, 8)
    s = 0.05

    # NOTE: weights are stored (in, out) and applied as x @ W; transpose when
    # loading real PyTorch nn.Linear checkpoints ((out, in), x @ W.T).
    def w(k, shape):
        return (s * jax.random.normal(k, shape, jnp.float32)).astype(jnp.bfloat16)

    return {
        "g1": jnp.ones((1, E), jnp.float32),
        "b1": jnp.zeros((1, E), jnp.float32),
        "wq": w(ks[0], (E, E)),
        "wk": w(ks[1], (E, E)),
        "wv": w(ks[2], (E, E)),
        "wo": w(ks[3], (E, E)),
        "bo": s * jax.random.normal(ks[4], (1, E), jnp.float32),
        "g2": jnp.ones((1, E), jnp.float32),
        "b2": jnp.zeros((1, E), jnp.float32),
        "w1": w(ks[5], (E, H)),
        "bf1": jnp.zeros((1, H), jnp.float32),
        "w2": w(ks[6], (H, E)),
        "bf2": jnp.zeros((1, E), jnp.float32),
    }


if __name__ == "__main__":
    # Small shapes: batch=2, seq=8, embedding=32, heads=4, ffn_expansion=4
    N, L, E, HEADS, FFN = 2, 8, 32, 4, 4

    key = jax.random.PRNGKey(0)
    kx, kp = jax.random.split(key)
    x = jax.random.normal(kx, (N, L, E), jnp.float32)
    params = init_params(kp, E, HEADS, FFN)

    try:
        out = jax.block_until_ready(transformer_block(x, params, heads=HEADS))
    except Exception:
        # Fallback: default (double) buffering if pl.Buffered(1) is unsupported.
        out = jax.block_until_ready(
            transformer_block(x, params, heads=HEADS, single_buffer_weights=False))

    ref = jax.block_until_ready(reference_forward(x, params, heads=HEADS))

    # Kernel uses bf16 MXU inputs + approx reciprocal; reference is f32 math.
    np.testing.assert_allclose(np.asarray(out), np.asarray(ref),
                               rtol=2e-2, atol=2e-2)
    print("KERNEL_OK")
</pallas_src>

<mosaic_0001>
module attributes {stable_mosaic.version = 11 : i64} {
  func.func @_ln_qkv_kernel(%arg0: i32, %arg1: i32, %arg2: memref<1x8x32xf32, #tpu.memory_space<vmem>>, %arg3: memref<1x32xf32, #tpu.memory_space<vmem>>, %arg4: memref<1x32xf32, #tpu.memory_space<vmem>>, %arg5: memref<32x32xbf16, #tpu.memory_space<vmem>>, %arg6: memref<32x32xbf16, #tpu.memory_space<vmem>>, %arg7: memref<32x32xbf16, #tpu.memory_space<vmem>>, %arg8: memref<1x8x32xbf16, #tpu.memory_space<vmem>>, %arg9: memref<1x8x32xbf16, #tpu.memory_space<vmem>>, %arg10: memref<1x8x32xbf16, #tpu.memory_space<vmem>>) attributes {dimension_semantics = [#tpu.dimension_semantics<parallel>, #tpu.dimension_semantics<parallel>], iteration_bounds = array<i64: 2, 1>, scalar_prefetch = 0 : i64, scratch_operands = 0 : i64, tpu.core_type = #tpu.core_type<tc>, window_params = [{transform_indices = @transform_0, window_bounds = array<i64: 1, 8, 32>}, {pipeline_mode = #tpu.pipeline_mode<synchronous>, transform_indices = @transform_1, window_bounds = array<i64: 1, 32>}, {pipeline_mode = #tpu.pipeline_mode<synchronous>, transform_indices = @transform_2, window_bounds = array<i64: 1, 32>}, {pipeline_mode = #tpu.pipeline_mode<synchronous>, transform_indices = @transform_3, window_bounds = array<i64: 32, 32>}, {pipeline_mode = #tpu.pipeline_mode<synchronous>, transform_indices = @transform_4, window_bounds = array<i64: 32, 32>}, {pipeline_mode = #tpu.pipeline_mode<synchronous>, transform_indices = @transform_5, window_bounds = array<i64: 32, 32>}, {transform_indices = @transform_6, window_bounds = array<i64: 1, 8, 32>}, {transform_indices = @transform_7, window_bounds = array<i64: 1, 8, 32>}, {transform_indices = @transform_8, window_bounds = array<i64: 1, 8, 32>}]} {
    %c0 = arith.constant 0 : index
    %c0_0 = arith.constant 0 : index
    %c0_1 = arith.constant 0 : index
    %0 = vector.load %arg2[%c0, %c0_0, %c0_1] : memref<1x8x32xf32, #tpu.memory_space<vmem>>, vector<1x8x32xf32>
    %1 = vector.shape_cast %0 : vector<1x8x32xf32> to vector<8x32xf32>
    %c0_2 = arith.constant 0 : index
    %c0_3 = arith.constant 0 : index
    %2 = vector.load %arg3[%c0_2, %c0_3] : memref<1x32xf32, #tpu.memory_space<vmem>>, vector<1x32xf32>
    %3 = vector.shape_cast %2 : vector<1x32xf32> to vector<32xf32>
    %c0_4 = arith.constant 0 : index
    %c0_5 = arith.constant 0 : index
    %4 = vector.load %arg4[%c0_4, %c0_5] : memref<1x32xf32, #tpu.memory_space<vmem>>, vector<1x32xf32>
    %5 = vector.shape_cast %4 : vector<1x32xf32> to vector<32xf32>
    %cst = arith.constant dense<0.000000e+00> : vector<8xf32>
    %6 = vector.multi_reduction <add>, %1, %cst [1] : vector<8x32xf32> to vector<8xf32>
    %7 = vector.shape_cast %6 : vector<8xf32> to vector<8x1xf32>
    %cst_6 = arith.constant 3.200000e+01 : f32
    %8 = vector.broadcast %cst_6 : f32 to vector<8x1xf32>
    %9 = arith.divf %7, %8 : vector<8x1xf32>
    %10 = vector.broadcast %9 : vector<8x1xf32> to vector<8x32xf32>
    %11 = arith.subf %1, %10 : vector<8x32xf32>
    %12 = arith.mulf %11, %11 : vector<8x32xf32>
    %cst_7 = arith.constant dense<0.000000e+00> : vector<8xf32>
    %13 = vector.multi_reduction <add>, %12, %cst_7 [1] : vector<8x32xf32> to vector<8xf32>
    %14 = vector.shape_cast %13 : vector<8xf32> to vector<8x1xf32>
    %cst_8 = arith.constant 3.200000e+01 : f32
    %15 = vector.broadcast %cst_8 : f32 to vector<8x1xf32>
    %16 = arith.divf %14, %15 : vector<8x1xf32>
    %cst_9 = arith.constant 9.99999974E-6 : f32
    %17 = vector.broadcast %cst_9 : f32 to vector<8x1xf32>
    %18 = arith.addf %16, %17 : vector<8x1xf32>
    %19 = math.rsqrt %18 : vector<8x1xf32>
    %20 = vector.broadcast %19 : vector<8x1xf32> to vector<8x32xf32>
    %21 = arith.mulf %11, %20 : vector<8x32xf32>
    %22 = vector.shape_cast %3 : vector<32xf32> to vector<1x32xf32>
    %23 = vector.broadcast %22 : vector<1x32xf32> to vector<8x32xf32>
    %24 = arith.mulf %21, %23 : vector<8x32xf32>
    %25 = vector.shape_cast %5 : vector<32xf32> to vector<1x32xf32>
    %26 = vector.broadcast %25 : vector<1x32xf32> to vector<8x32xf32>
    %27 = arith.addf %24, %26 : vector<8x32xf32>
    %28 = arith.truncf %27 : vector<8x32xf32> to vector<8x32xbf16>
    %c0_10 = arith.constant 0 : index
    %c0_11 = arith.constant 0 : index
    %29 = vector.load %arg5[%c0_10, %c0_11] : memref<32x32xbf16, #tpu.memory_space<vmem>>, vector<32x32xbf16>
    %cst_12 = arith.constant dense<0.000000e+00> : vector<8x32xf32>
    %30 = tpu.matmul %28, %29, %cst_12 {dimension_numbers = #tpu.dot_dimension_numbers<[1], [0], [0], [1], [0, 0, 1, 1], [], []>} : vector<8x32xbf16>, vector<32x32xbf16>, vector<8x32xf32> -> vector<8x32xf32>
    %cst_13 = arith.constant 0.176776692 : f32
    %31 = vector.broadcast %cst_13 : f32 to vector<8x32xf32>
    %32 = arith.mulf %30, %31 : vector<8x32xf32>
    %33 = arith.truncf %32 : vector<8x32xf32> to vector<8x32xbf16>
    %c0_14 = arith.constant 0 : index
    %c0_15 = arith.constant 0 : index
    %c0_16 = arith.constant 0 : index
    %34 = vector.load %arg8[%c0_14, %c0_15, %c0_16] : memref<1x8x32xbf16, #tpu.memory_space<vmem>>, vector<1x8x32xbf16>
    %35 = vector.shape_cast %34 : vector<1x8x32xbf16> to vector<8x32xbf16>
    %36 = vector.shape_cast %33 : vector<8x32xbf16> to vector<1x8x32xbf16>
    tpu.vector_store %arg8[%c0_14, %c0_15, %c0_16], %36 {strides = array<i32>} : memref<1x8x32xbf16, #tpu.memory_space<vmem>>, vector<1x8x32xbf16>,
    %c0_17 = arith.constant 0 : index
    %c0_18 = arith.constant 0 : index
    %37 = vector.load %arg6[%c0_17, %c0_18] : memref<32x32xbf16, #tpu.memory_space<vmem>>, vector<32x32xbf16>
    %cst_19 = arith.constant dense<0.000000e+00> : vector<8x32xf32>
    %38 = tpu.matmul %28, %37, %cst_19 {dimension_numbers = #tpu.dot_dimension_numbers<[1], [0], [0], [1], [0, 0, 1, 1], [], []>} : vector<8x32xbf16>, vector<32x32xbf16>, vector<8x32xf32> -> vector<8x32xf32>
    %39 = arith.truncf %38 : vector<8x32xf32> to vector<8x32xbf16>
    %c0_20 = arith.constant 0 : index
    %c0_21 = arith.constant 0 : index
    %c0_22 = arith.constant 0 : index
    %40 = vector.load %arg9[%c0_20, %c0_21, %c0_22] : memref<1x8x32xbf16, #tpu.memory_space<vmem>>, vector<1x8x32xbf16>
    %41 = vector.shape_cast %40 : vector<1x8x32xbf16> to vector<8x32xbf16>
    %42 = vector.shape_cast %39 : vector<8x32xbf16> to vector<1x8x32xbf16>
    tpu.vector_store %arg9[%c0_20, %c0_21, %c0_22], %42 {strides = array<i32>} : memref<1x8x32xbf16, #tpu.memory_space<vmem>>, vector<1x8x32xbf16>,
    %c0_23 = arith.constant 0 : index
    %c0_24 = arith.constant 0 : index
    %43 = vector.load %arg7[%c0_23, %c0_24] : memref<32x32xbf16, #tpu.memory_space<vmem>>, vector<32x32xbf16>
    %cst_25 = arith.constant dense<0.000000e+00> : vector<8x32xf32>
    %44 = tpu.matmul %28, %43, %cst_25 {dimension_numbers = #tpu.dot_dimension_numbers<[1], [0], [0], [1], [0, 0, 1, 1], [], []>} : vector<8x32xbf16>, vector<32x32xbf16>, vector<8x32xf32> -> vector<8x32xf32>
    %45 = arith.truncf %44 : vector<8x32xf32> to vector<8x32xbf16>
    %c0_26 = arith.constant 0 : index
    %c0_27 = arith.constant 0 : index
    %c0_28 = arith.constant 0 : index
    %46 = vector.load %arg10[%c0_26, %c0_27, %c0_28] : memref<1x8x32xbf16, #tpu.memory_space<vmem>>, vector<1x8x32xbf16>
    %47 = vector.shape_cast %46 : vector<1x8x32xbf16> to vector<8x32xbf16>
    %48 = vector.shape_cast %45 : vector<8x32xbf16> to vector<1x8x32xbf16>
    tpu.vector_store %arg10[%c0_26, %c0_27, %c0_28], %48 {strides = array<i32>} : memref<1x8x32xbf16, #tpu.memory_space<vmem>>, vector<1x8x32xbf16>,
    return
  }
  func.func @transform_0(%arg0: i32, %arg1: i32) -> (i32, i32, i32) {
    %c0_i32 = arith.constant 0 : i32
    %c0_i32_0 = arith.constant 0 : i32
    return %arg0, %arg1, %c0_i32 : i32, i32, i32
  }
  func.func @transform_1(%arg0: i32, %arg1: i32) -> (i32, i32) {
    %c0_i32 = arith.constant 0 : i32
    %c0_i32_0 = arith.constant 0 : i32
    %c0_i32_1 = arith.constant 0 : i32
    return %c0_i32, %c0_i32_0 : i32, i32
  }
  func.func @transform_2(%arg0: i32, %arg1: i32) -> (i32, i32) {
    %c0_i32 = arith.constant 0 : i32
    %c0_i32_0 = arith.constant 0 : i32
    %c0_i32_1 = arith.constant 0 : i32
    return %c0_i32, %c0_i32_0 : i32, i32
  }
  func.func @transform_3(%arg0: i32, %arg1: i32) -> (i32, i32) {
    %c0_i32 = arith.constant 0 : i32
    %c0_i32_0 = arith.constant 0 : i32
    %c0_i32_1 = arith.constant 0 : i32
    return %c0_i32, %c0_i32_0 : i32, i32
  }
  func.func @transform_4(%arg0: i32, %arg1: i32) -> (i32, i32) {
    %c0_i32 = arith.constant 0 : i32
    %c0_i32_0 = arith.constant 0 : i32
    %c0_i32_1 = arith.constant 0 : i32
    return %c0_i32, %c0_i32_0 : i32, i32
  }
  func.func @transform_5(%arg0: i32, %arg1: i32) -> (i32, i32) {
    %c0_i32 = arith.constant 0 : i32
    %c0_i32_0 = arith.constant 0 : i32
    %c0_i32_1 = arith.constant 0 : i32
    return %c0_i32, %c0_i32_0 : i32, i32
  }
  func.func @transform_6(%arg0: i32, %arg1: i32) -> (i32, i32, i32) {
    %c0_i32 = arith.constant 0 : i32
    %c0_i32_0 = arith.constant 0 : i32
    return %arg0, %arg1, %c0_i32 : i32, i32, i32
  }
  func.func @transform_7(%arg0: i32, %arg1: i32) -> (i32, i32, i32) {
    %c0_i32 = arith.constant 0 : i32
    %c0_i32_0 = arith.constant 0 : i32
    return %arg0, %arg1, %c0_i32 : i32, i32, i32
  }
  func.func @transform_8(%arg0: i32, %arg1: i32) -> (i32, i32, i32) {
    %c0_i32 = arith.constant 0 : i32
    %c0_i32_0 = arith.constant 0 : i32
    return %arg0, %arg1, %c0_i32 : i32, i32, i32
  }
}

module attributes {stable_mosaic.version = 11 : i64} {
  func.func @_ln_qkv_kernel(%arg0: i32, %arg1: i32, %arg2: memref<1x8x32xf32, #tpu.memory_space<vmem>>, %arg3: memref<1x32xf32, #tpu.memory_space<vmem>>, %arg4: memref<1x32xf32, #tpu.memory_space<vmem>>, %arg5: memref<32x32xbf16, #tpu.memory_space<vmem>>, %arg6: memref<32x32xbf16, #tpu.memory_space<vmem>>, %arg7: memref<32x32xbf16, #tpu.memory_space<vmem>>, %arg8: memref<1x8x32xbf16, #tpu.memory_space<vmem>>, %arg9: memref<1x8x32xbf16, #tpu.memory_space<vmem>>, %arg10: memref<1x8x32xbf16, #tpu.memory_space<vmem>>) attributes {dimension_semantics = [#tpu.dimension_semantics<parallel>, #tpu.dimension_semantics<parallel>], iteration_bounds = array<i64: 2, 1>, scalar_prefetch = 0 : i64, scratch_operands = 0 : i64, tpu.core_type = #tpu.core_type<tc>, window_params = [{transform_indices = @transform_0, window_bounds = array<i64: 1, 8, 32>}, {pipeline_mode = #tpu.pipeline_mode<synchronous>, transform_indices = @transform_1, window_bounds = array<i64: 1, 32>}, {pipeline_mode = #tpu.pipeline_mode<synchronous>, transform_indices = @transform_2, window_bounds = array<i64: 1, 32>}, {pipeline_mode = #tpu.pipeline_mode<synchronous>, transform_indices = @transform_3, window_bounds = array<i64: 32, 32>}, {pipeline_mode = #tpu.pipeline_mode<synchronous>, transform_indices = @transform_4, window_bounds = array<i64: 32, 32>}, {pipeline_mode = #tpu.pipeline_mode<synchronous>, transform_indices = @transform_5, window_bounds = array<i64: 32, 32>}, {transform_indices = @transform_6, window_bounds = array<i64: 1, 8, 32>}, {transform_indices = @transform_7, window_bounds = array<i64: 1, 8, 32>}, {transform_indices = @transform_8, window_bounds = array<i64: 1, 8, 32>}]} {
    %c0 = arith.constant 0 : index
    %c0_0 = arith.constant 0 : index
    %c0_1 = arith.constant 0 : index
    %0 = vector.load %arg2[%c0, %c0_0, %c0_1] : memref<1x8x32xf32, #tpu.memory_space<vmem>>, vector<1x8x32xf32>
    %1 = vector.shape_cast %0 : vector<1x8x32xf32> to vector<8x32xf32>
    %c0_2 = arith.constant 0 : index
    %c0_3 = arith.constant 0 : index
    %2 = vector.load %arg3[%c0_2, %c0_3] : memref<1x32xf32, #tpu.memory_space<vmem>>, vector<1x32xf32>
    %3 = vector.shape_cast %2 : vector<1x32xf32> to vector<32xf32>
    %c0_4 = arith.constant 0 : index
    %c0_5 = arith.constant 0 : index
    %4 = vector.load %arg4[%c0_4, %c0_5] : memref<1x32xf32, #tpu.memory_space<vmem>>, vector<1x32xf32>
    %5 = vector.shape_cast %4 : vector<1x32xf32> to vector<32xf32>
    %cst = arith.constant dense<0.000000e+00> : vector<8xf32>
    %6 = vector.multi_reduction <add>, %1, %cst [1] : vector<8x32xf32> to vector<8xf32>
    %7 = vector.shape_cast %6 : vector<8xf32> to vector<8x1xf32>
    %cst_6 = arith.constant 3.200000e+01 : f32
    %8 = vector.broadcast %cst_6 : f32 to vector<8x1xf32>
    %9 = arith.divf %7, %8 : vector<8x1xf32>
    %10 = vector.broadcast %9 : vector<8x1xf32> to vector<8x32xf32>
    %11 = arith.subf %1, %10 : vector<8x32xf32>
    %12 = arith.mulf %11, %11 : vector<8x32xf32>
    %cst_7 = arith.constant dense<0.000000e+00> : vector<8xf32>
    %13 = vector.multi_reduction <add>, %12, %cst_7 [1] : vector<8x32xf32> to vector<8xf32>
    %14 = vector.shape_cast %13 : vector<8xf32> to vector<8x1xf32>
    %cst_8 = arith.constant 3.200000e+01 : f32
    %15 = vector.broadcast %cst_8 : f32 to vector<8x1xf32>
    %16 = arith.divf %14, %15 : vector<8x1xf32>
    %cst_9 = arith.constant 9.99999974E-6 : f32
    %17 = vector.broadcast %cst_9 : f32 to vector<8x1xf32>
    %18 = arith.addf %16, %17 : vector<8x1xf32>
    %19 = math.rsqrt %18 : vector<8x1xf32>
    %20 = vector.broadcast %19 : vector<8x1xf32> to vector<8x32xf32>
    %21 = arith.mulf %11, %20 : vector<8x32xf32>
    %22 = vector.shape_cast %3 : vector<32xf32> to vector<1x32xf32>
    %23 = vector.broadcast %22 : vector<1x32xf32> to vector<8x32xf32>
    %24 = arith.mulf %21, %23 : vector<8x32xf32>
    %25 = vector.shape_cast %5 : vector<32xf32> to vector<1x32xf32>
    %26 = vector.broadcast %25 : vector<1x32xf32> to vector<8x32xf32>
    %27 = arith.addf %24, %26 : vector<8x32xf32>
    %28 = arith.truncf %27 : vector<8x32xf32> to vector<8x32xbf16>
    %c0_10 = arith.constant 0 : index
    %c0_11 = arith.constant 0 : index
    %29 = vector.load %arg5[%c0_10, %c0_11] : memref<32x32xbf16, #tpu.memory_space<vmem>>, vector<32x32xbf16>
    %cst_12 = arith.constant dense<0.000000e+00> : vector<8x32xf32>
    %30 = tpu.matmul %28, %29, %cst_12 {dimension_numbers = #tpu.dot_dimension_numbers<[1], [0], [0], [1], [0, 0, 1, 1], [], []>} : vector<8x32xbf16>, vector<32x32xbf16>, vector<8x32xf32> -> vector<8x32xf32>
    %cst_13 = arith.constant 0.176776692 : f32
    %31 = vector.broadcast %cst_13 : f32 to vector<8x32xf32>
    %32 = arith.mulf %30, %31 : vector<8x32xf32>
    %33 = arith.truncf %32 : vector<8x32xf32> to vector<8x32xbf16>
    %c0_14 = arith.constant 0 : index
    %c0_15 = arith.constant 0 : index
    %c0_16 = arith.constant 0 : index
    %34 = vector.load %arg8[%c0_14, %c0_15, %c0_16] : memref<1x8x32xbf16, #tpu.memory_space<vmem>>, vector<1x8x32xbf16>
    %35 = vector.shape_cast %34 : vector<1x8x32xbf16> to vector<8x32xbf16>
    %36 = vector.shape_cast %33 : vector<8x32xbf16> to vector<1x8x32xbf16>
    tpu.vector_store %arg8[%c0_14, %c0_15, %c0_16], %36 {strides = array<i32>} : memref<1x8x32xbf16, #tpu.memory_space<vmem>>, vector<1x8x32xbf16>,
    %c0_17 = arith.constant 0 : index
    %c0_18 = arith.constant 0 : index
    %37 = vector.load %arg6[%c0_17, %c0_18] : memref<32x32xbf16, #tpu.memory_space<vmem>>, vector<32x32xbf16>
    %cst_19 = arith.constant dense<0.000000e+00> : vector<8x32xf32>
    %38 = tpu.matmul %28, %37, %cst_19 {dimension_numbers = #tpu.dot_dimension_numbers<[1], [0], [0], [1], [0, 0, 1, 1], [], []>} : vector<8x32xbf16>, vector<32x32xbf16>, vector<8x32xf32> -> vector<8x32xf32>
    %39 = arith.truncf %38 : vector<8x32xf32> to vector<8x32xbf16>
    %c0_20 = arith.constant 0 : index
    %c0_21 = arith.constant 0 : index
    %c0_22 = arith.constant 0 : index
    %40 = vector.load %arg9[%c0_20, %c0_21, %c0_22] : memref<1x8x32xbf16, #tpu.memory_space<vmem>>, vector<1x8x32xbf16>
    %41 = vector.shape_cast %40 : vector<1x8x32xbf16> to vector<8x32xbf16>
    %42 = vector.shape_cast %39 : vector<8x32xbf16> to vector<1x8x32xbf16>
    tpu.vector_store %arg9[%c0_20, %c0_21, %c0_22], %42 {strides = array<i32>} : memref<1x8x32xbf16, #tpu.memory_space<vmem>>, vector<1x8x32xbf16>,
    %c0_23 = arith.constant 0 : index
    %c0_24 = arith.constant 0 : index
    %43 = vector.load %arg7[%c0_23, %c0_24] : memref<32x32xbf16, #tpu.memory_space<vmem>>, vector<32x32xbf16>
    %cst_25 = arith.constant dense<0.000000e+00> : vector<8x32xf32>
    %44 = tpu.matmul %28, %43, %cst_25 {dimension_numbers = #tpu.dot_dimension_numbers<[1], [0], [0], [1], [0, 0, 1, 1], [], []>} : vector<8x32xbf16>, vector<32x32xbf16>, vector<8x32xf32> -> vector<8x32xf32>
    %45 = arith.truncf %44 : vector<8x32xf32> to vector<8x32xbf16>
    %c0_26 = arith.constant 0 : index
    %c0_27 = arith.constant 0 : index
    %c0_28 = arith.constant 0 : index
    %46 = vector.load %arg10[%c0_26, %c0_27, %c0_28] : memref<1x8x32xbf16, #tpu.memory_space<vmem>>, vector<1x8x32xbf16>
    %47 = vector.shape_cast %46 : vector<1x8x32xbf16> to vector<8x32xbf16>
    %48 = vector.shape_cast %45 : vector<8x32xbf16> to vector<1x8x32xbf16>
    tpu.vector_store %arg10[%c0_26, %c0_27, %c0_28], %48 {strides = array<i32>} : memref<1x8x32xbf16, #tpu.memory_space<vmem>>, vector<1x8x32xbf16>,
    return
  }
  func.func @transform_0(%arg0: i32, %arg1: i32) -> (i32, i32, i32) {
    %c0_i32 = arith.constant 0 : i32
    %c0_i32_0 = arith.constant 0 : i32
    return %arg0, %arg1, %c0_i32 : i32, i32, i32
  }
  func.func @transform_1(%arg0: i32, %arg1: i32) -> (i32, i32) {
    %c0_i32 = arith.constant 0 : i32
    %c0_i32_0 = arith.constant 0 : i32
    %c0_i32_1 = arith.constant 0 : i32
    return %c0_i32, %c0_i32_0 : i32, i32
  }
  func.func @transform_2(%arg0: i32, %arg1: i32) -> (i32, i32) {
    %c0_i32 = arith.constant 0 : i32
    %c0_i32_0 = arith.constant 0 : i32
    %c0_i32_1 = arith.constant 0 : i32
    return %c0_i32, %c0_i32_0 : i32, i32
  }
  func.func @transform_3(%arg0: i32, %arg1: i32) -> (i32, i32) {
    %c0_i32 = arith.constant 0 : i32
    %c0_i32_0 = arith.constant 0 : i32
    %c0_i32_1 = arith.constant 0 : i32
    return %c0_i32, %c0_i32_0 : i32, i32
  }
  func.func @transform_4(%arg0: i32, %arg1: i32) -> (i32, i32) {
    %c0_i32 = arith.constant 0 : i32
    %c0_i32_0 = arith.constant 0 : i32
    %c0_i32_1 = arith.constant 0 : i32
    return %c0_i32, %c0_i32_0 : i32, i32
  }
  func.func @transform_5(%arg0: i32, %arg1: i32) -> (i32, i32) {
    %c0_i32 = arith.constant 0 : i32
    %c0_i32_0 = arith.constant 0 : i32
    %c0_i32_1 = arith.constant 0 : i32
    return %c0_i32, %c0_i32_0 : i32, i32
  }
  func.func @transform_6(%arg0: i32, %arg1: i32) -> (i32, i32, i32) {
    %c0_i32 = arith.constant 0 : i32
    %c0_i32_0 = arith.constant 0 : i32
    return %arg0, %arg1, %c0_i32 : i32, i32, i32
  }
  func.func @transform_7(%arg0: i32, %arg1: i32) -> (i32, i32, i32) {
    %c0_i32 = arith.constant 0 : i32
    %c0_i32_0 = arith.constant 0 : i32
    return %arg0, %arg1, %c0_i32 : i32, i32, i32
  }
  func.func @transform_8(%arg0: i32, %arg1: i32) -> (i32, i32, i32) {
    %c0_i32 = arith.constant 0 : i32
    %c0_i32_0 = arith.constant 0 : i32
    return %arg0, %arg1, %c0_i32 : i32, i32, i32
  }
}

</mosaic_0001>

<bundles_post_ra>
// kernel: tpu_custom_call.1
= control target key start
LH: loop header
LB: loop body
LE: loop exit
PB: predicated region body
PF: predicated region fallthrough
CT: control target
= control target key end

     0   :  { %s1624_s0 = inlined_call_operand.hbm [shape: f32[2,8,32], index: 0, kind: input, shape index: {}]   ;;  %s1625_s1 = inlined_call_operand.vmem [shape: f32[1,32], index: 1, kind: input, shape index: {}]   ;;  %s1626_s2 = inlined_call_operand.vmem [shape: f32[1,32], index: 2, kind: input, shape index: {}]   ;;  %s1627_s3 = inlined_call_operand.hbm [shape: bf16[32,32], index: 3, kind: input, shape index: {}]   ;;  %s1628_s4 = inlined_call_operand.hbm [shape: bf16[32,32], index: 4, kind: input, shape index: {}]   ;;  %s1629_s5 = inlined_call_operand.hbm [shape: bf16[32,32], index: 5, kind: input, shape index: {}]   ;;  %s1630_s6 = inlined_call_operand.hbm [shape: bf16[2,8,32], index: 6, kind: output, shape index: {0}]   ;;  %s1631_s7 = inlined_call_operand.hbm [shape: bf16[2,8,32], index: 7, kind: output, shape index: {1}]   ;;  %s1632_s8 = inlined_call_operand.hbm [shape: bf16[2,8,32], index: 8, kind: output, shape index: {2}]  }
   0x1   :  { %1638 = sst [smem:[#allocation20_spill]] %s1627_s3 }
   0x2   :  { %1639 = sst [smem:[#allocation21_spill]] %s1628_s4 }
   0x3   :  { %1640 = sst [smem:[#allocation22_spill]] %s1629_s5 }
   0x4   :  { %14 = vsyncpa [#allocation3], 0 }
   0x5   :  { %16 = vsyncpa [#allocation3 + $0x1], 0 }
   0x6   :  { %17 = vsyncpa [#allocation6], 0 }
   0x7   :  { %18 = vsyncpa [#allocation9], 0 }
   0x8   :  { %19 = vsyncpa [#allocation4], 0 }
   0x9   :  { %21 = vsyncpa [#allocation4 + $0x1], 0 }
   0xa   :  { %22 = vsyncpa [#allocation12], 0 }
   0xb   :  { %24 = vsyncpa [#allocation12 + $0x1], 0  ;;  %s1334_s27 = smov 0   ;;  %s1336_s28 = smov 0  }
   0xc   :  { %s1338_s29 = smov 0   ;;  %s1340_s30 = smov 0  }
   0xd   :  { %s1342_s9 = smov 0   ;;  %s1344_s10 = smov 0  }
   0xe LB: > { %s1365_s11 = sadd.s32 4294967295, %s1276_s10   ;;  %s1635_s12 = sadd.s32 4294967294, %s1276_s10   ;;  %s1276_s10 = sphi %s1344_s10, %s30_s10   ;;  %s1272_s9 = sphi %s1342_s9, %s1666_s9   ;;  %s1268_s30 = sphi %s1340_s30, %s1665_s30   ;;  %s1264_s29 = sphi %s1338_s29, %s1664_s29   ;;  %s1260_s28 = sphi %s1336_s28, %s1663_s28   ;;  %s1256_s27 = sphi %s1334_s27, %s1662_s27  }
   0xf   : > { %p64_p0 = scmp.ne.s32.totalorder %s1260_s28, %s1256_s27  ;;  %p1633_p1 = scmp.eq.s32.totalorder %s1365_s11, 0 }
  0x10   : > { %p201_p3 = scmp.eq.s32.totalorder %s1635_s12, 1  ;;  %p844_p5 = scmp.ge.s32.totalorder %s1276_s10, 1 }
  0x11   : > { %p1376_p4 = por %p1633_p1, %p64_p0  ;;  %p264_p7 = scmp.lt.s32.totalorder %s1276_s10, 3 }
  0x12   : > { %p1381_p6 = por %p201_p3, %p64_p0  ;;  %s1278_s16 = smov [#allocation5]  }
  0x13   : > { %s1641_s13 = scalar_select %p1376_p4, 1, 0 }
  0x14   : > { %s1642_s14 = scalar_select %p1381_p6, 1, 0 }
  0x15   : > { %p1386_p8 = pnand %p844_p5, %p264_p7  ;;  %s282_s17 = sshll.u32 %s1278_s16, 4  ;;  %s283_s17 = int_to_ptr.vmem [resolvable:$true] %s282_s17 }
  0x16   : > { %s1279_s19 = smov [#allocation7]   ;;  %s1280_s21 = smov [#allocation8]  }
  0x17   : > { %p931_p9 = pneg %p1386_p8  ;;  %s295_s20 = sshll.u32 %s1279_s19, 4  ;;  %s296_s20 = int_to_ptr.vmem [resolvable:$true] %s295_s20 }
  0x18   : > { %s308_s22 = sshll.u32 %s1280_s21, 4  ;;  %s1037_s23 = scalar_lea.vmem %s283_s17, 256  ;;  %s309_s22 = int_to_ptr.vmem [resolvable:$true] %s308_s22 }
  0x19   : > { %p1395_p11 = pnand %p931_p9, %p1633_p1  ;;  %p1038_p13 = scmp.ne.s32.totalorder %s283_s17, %s1037_s23 }
  0x1a   : > { %p1045_p5 = scmp.lt.s32.totalorder %s283_s17, %s283_s17  ;;  %p1046_p7 = scmp.lt.s32.totalorder %s1037_s23, %s1037_s23 }
  0x1b   : > { %p1028_p12 = pneg %p1395_p11 }
  0x1c   : > { %p1047_p9 = por %p1046_p7, %p1045_p5 }
  0x1d   : > { %p1040_p0 = pnand %p1038_p13, %p1028_p12 }
  0x1f   : > { %p1041_p3 = pneg %p1040_p0 }
  0x21   : > { %p1048_p10 = pnand %p1047_p9, %p1041_p3 }
  0x23   : > { %1051 = shalt.err (!%p1048_p10)
}
  0x24   : > { %s1281_s24 = smov 64   ;;  %s1282_s25 = smov 4  }
  0x25   : > { %s1645_s3 = sld [smem:[#allocation20_spill]]  ;;  %s1063_s19 = scalar_lea.vmem %s296_s20, 256 }
  0x26   : > { %p1064_p1 = scmp.ne.s32.totalorder %s296_s20, %s1063_s19  ;;  %p1071_p2 = scmp.lt.s32.totalorder %s296_s20, %s296_s20 }
  0x27   : > { %p1072_p6 = scmp.lt.s32.totalorder %s1063_s19, %s1063_s19 }
  0x28   : > { %p1066_p13 = pnand %p1064_p1, %p1028_p12 }
  0x29   : > { %p1073_p5 = por %p1072_p6, %p1071_p2 }
  0x2a   : > { %p1067_p0 = pneg %p1066_p13 }
  0x2b   : > { %934 = dma.hbm_to_vmem [thread:$0]  (!%p1395_p11), %s1645_s3, 256, %s283_s17, [#allocation6], %s1281_s24, %s1281_s24, %s1282_s25  }
  0x2c   : > { %p1074_p3 = pnand %p1073_p5, %p1067_p0 }
  0x2e   : > { %1077 = shalt.err (!%p1074_p3)
}
  0x2f   : > { %s1646_s4 = sld [smem:[#allocation21_spill]]  ;;  %s1089_s17 = scalar_lea.vmem %s309_s22, 256 }
  0x30   : > { %p1090_p10 = scmp.ne.s32.totalorder %s309_s22, %s1089_s17  ;;  %p1097_p9 = scmp.lt.s32.totalorder %s309_s22, %s309_s22 }
  0x31   : > { %p1098_p13 = scmp.lt.s32.totalorder %s1089_s17, %s1089_s17 }
  0x32   : > { %p1092_p7 = pnand %p1090_p10, %p1028_p12 }
  0x33   : > { %p1099_p4 = por %p1098_p13, %p1097_p9 }
  0x34   : > { %p1093_p1 = pneg %p1092_p7 }
  0x35   : > { %937 = dma.hbm_to_vmem [thread:$0]  (!%p1395_p11), %s1646_s4, 256, %s296_s20, [#allocation6], %s1281_s24, %s1281_s24, %s1282_s25  }
  0x36   : > { %p1100_p2 = pnand %p1099_p4, %p1093_p1 }
  0x38   : > { %1103 = shalt.err (!%p1100_p2)
}
  0x39   : > { %s1647_s5 = sld [smem:[#allocation22_spill]]  ;;  %s51_s20 = sadd.s32 1, %s1264_s29 }
  0x3a   : > { %s42_s19 = sadd.s32 1, %s1272_s9  ;;  %p58_p4 = scmp.ne.s32.totalorder %s1264_s29, %s1260_s28 }
  0x3b   : > { %p44_p6 = scmp.ge.s32.totalorder %s42_s19, 2  ;;  %p59_p12 = scmp.eq.s32.totalorder %s1276_s10, 0 }
  0x3c   : > { %p1648_p0 = scmp.eq.s32.totalorder %s1365_s11, 1  ;;  %p958_p3 = scmp.lt.s32.totalorder %s1276_s10, 2 }
  0x3d   : > { %s1668_s19 = smov (%p44_p6, %s42_s19), 0  ;;  %p60_p10 = por %p59_p12, %p58_p4 }
  0x3e   : > { %p1432_p5 = por %p1648_p0, %p58_p4  ;;  %1650 = sst [smem:[#allocation19_spill]] %s1668_s19 }
  0x3f   : > { %940 = dma.hbm_to_vmem [thread:$0]  (!%p1395_p11), %s1647_s5, 256, %s309_s22, [#allocation9], %s1281_s24, %s1281_s24, %s1282_s25  }
  0x40   : > { %s322_s21 = sand.u32 1, %s1264_s29   ;;  %s46_s23 = ssub.s32 %s1272_s9, %s1668_s19 }
  0x41   : > { %p49_p7 = scmp.eq.s32.totalorder %s46_s23, 0  ;;  %s849_s22 = sshll.u32 %s322_s21, 3 }
  0x42   : > { %s850_s24 = sshll.u32 %s1272_s9, 7  ;;  %s326_s12 = scalar_lea.vmem [#allocation2], %s849_s22 }
  0x43   : > { %s1444_s25 = scalar_select %p49_p7, %s1264_s29, %s51_s20  }
  0x44   : > { %s332_s16 = scalar_lea.hbm %s1624_s0, %s850_s24  ;;  %s334_s3 = sshll.u32 %s326_s12, 4  ;;  %s335_s3 = int_to_ptr.vmem [resolvable:$true] %s334_s3 }
  0x45   : > { %p1451_p11 = pnand %p958_p3, %p60_p10  ;;  %s323_s5 = scalar_lea.sflag [#allocation3], %s322_s21 }
  0x46   : > { %s1117_s23 = scalar_lea.vmem %s335_s3, 128  ;;  %s1283_s20 = smov [#allocation2]  }
  0x47   : > { %p1106_p1 = pneg %p1451_p11  ;;  %p1118_p9 = scmp.ne.s32.totalorder %s335_s3, %s1117_s23 }
  0x48   : > { %s1122_s19 = sshll.u32 %s1283_s20, 4  ;;  %s1123_s19 = int_to_ptr.vmem [resolvable:$false] %s1122_s19 }
  0x49   : > { %p1120_p13 = pnand %p1118_p9, %p1106_p1  ;;  %s1124_s24 = scalar_lea.vmem %s1123_s19, 256 }
  0x4a   : > { %p1125_p4 = scmp.lt.s32.totalorder %s335_s3, %s1123_s19  ;;  %p1126_p6 = scmp.lt.s32.totalorder %s1124_s24, %s1117_s23 }
  0x4b   : > { %p1121_p2 = pneg %p1120_p13 }
  0x4c   : > { %p1127_p12 = por %p1126_p6, %p1125_p4 }
  0x4e   : > { %p1128_p0 = pnand %p1127_p12, %p1121_p2 }
  0x50   : > { %1131 = shalt.err (!%p1128_p0)
}
  0x51   : > { %944 = dma.hbm_to_vmem [thread:$0]  (!%p1451_p11), %s332_s16, 128, %s335_s3, %s323_s5  }
  0x52   : > { %343 = sbr.rel (%p1386_p8) target bundleno = 665 (0x299), region = 44  ;;  %s1462_s12 = sand.u32 (!%p1386_p8), 1, %s1260_s28  }
  0x53   : > { %s852_s21 = sshll.u32 (!%p1386_p8), %s1462_s12, 3  ;;  %s346_s22 = scalar_lea.sflag (!%p1386_p8), [#allocation3], %s1462_s12 }
  0x54   : > { %s349_s17 = scalar_lea.vmem (!%p1386_p8), [#allocation2], %s852_s21  ;;  %p1652_p3 = scmp.ne.s32.totalorder (!%p1386_p8), %s1641_s13, 0 }
  0x57   : > { %1235 = dma.done.wait (%p1652_p3), %s346_s22, 128  }
  0x58   : > { %1237 = vsyncadd (%p1652_p3), %s346_s22, 4294967168  ;;  %p1653_p10 = scmp.eq.s32.totalorder %s1365_s11, 0 }
  0x5a   : > { %1239 = dma.done.wait (%p1653_p10), [#allocation6], 512   ;;  %p1654_p7 = pmov %p1653_p10 }
  0x5c   : > { %1241 = vsyncadd (%p1654_p7), [#allocation6], 4294966784  ;;  %p1655_p8 = pmov %p1654_p7 }
  0x5d   : > { %p1656_p11 = pmov %p1654_p7 }
  0x5e   : > { %1243 = dma.done.wait (%p1655_p8), [#allocation9], 256  }
  0x5f   : > { %1245 = vsyncadd (%p1656_p11), [#allocation9], 4294967040  ;;  %vm408_vm0 = vcmask 261120   ;;  %v405_v0 = vld [vmem:[%s349_s17] sm:$0xff]  ;;  %v1018_v7 = vld [vmem:[#allocation5 + $0x8] sm:$0xff]   ;;  %v1284_v9 = vmov 0.0  }
  0x60   : > { %v409_v1 = vsel %vm408_vm0, %v405_v0, 0.0  ;;  %v1019_v8 = vld [vmem:[#allocation7 + $0x8] sm:$0xff]   ;;  %887 = vmatprep.subr.bf16.mxu0 %v1284_v9  ;;  %895 = vmatprep.subr.bf16.mxu1 %v1284_v9  ;;  %v1020_v10 = vld [vmem:[#allocation5] sm:$0xff]   ;;  %v1021_v11 = vld [vmem:[#allocation7] sm:$0xff]   ;;  %vm1285_vm1 = vmmov 0   ;;  %s1493_s15 = sshll.u32 %s1462_s12, 2 }
  0x61   : > { %410 = vadd.xlane.f32.xlu0 %v409_v1  ;;  %888 = vmatpush3.bf16.msra.mxu0 %v1018_v7  ;;  %v859_v16 = vld [vmem:[%s1625_s1] ss:$0 sm:$0xff]  ;;  %v1022_v21 = vld [vmem:[#allocation8 + $0x8] sm:$0xff]   ;;  %v1023_v23 = vld [vmem:[#allocation8] sm:$0xff]   ;;  %s622_s19 = sand.u32 1, %s1365_s11   ;;  %s1497_s26 = sshll.u32 %s1268_s30, 6 }
  0x62   : > { %896 = vmatpush3.bf16.msra.mxu1 %v1019_v8  ;;  %889 = vmatprep.subr.bf16.mxu0 %v1284_v9  ;;  %v860_v18 = vld [vmem:[%s1626_s2] ss:$0 sm:$0xff]  ;;  %s396_s16 = scalar_lea.vmem [#allocation11], %s1493_s15  ;;  %vm499_vm2 = vcmask 257024   ;;  %s1637_s20 = scalar_lea.vmem [#allocation10], %s1493_s15 }
  0x63   : > { %897 = vmatprep.subr.bf16.mxu1 %v1284_v9  ;;  %891 = vmatprep.mubr.msk.bf16.mxu0 %vm1285_vm1, %v1284_v9  ;;  %s656_s23 = sshll.u32 %s396_s16, 4  ;;  %s642_s24 = sshll.u32 %s1637_s20, 4  ;;  %s1509_s23 = int_to_ptr.vmem [resolvable:$true] %s656_s23  ;;  %s1518_s24 = int_to_ptr.vmem [resolvable:$true] %s642_s24 }
  0x64   : > { %899 = vmatprep.mubr.msk.bf16.mxu1 %vm1285_vm1, %v1284_v9  ;;  %s1507_s17 = scalar_lea.hbm %s1631_s7, %s1497_s26  ;;  %s1516_s3 = scalar_lea.hbm %s1630_s6, %s1497_s26 }
  0x65   : > { %890 = vmatpush3.bf16.msra.mxu0 %v1020_v10  ;;  %s1520_s4 = scalar_lea.sflag [#allocation12], %s622_s19  ;;  %s1132_s5 = scalar_lea.vmem %s1509_s23, 64 }
  0x66   : > { %898 = vmatpush3.bf16.msra.mxu1 %v1021_v11  ;;  %903 = vmatprep.subr.bf16.mxu0 %v1284_v9  ;;  %p1133_p1 = scmp.ne.s32.totalorder %s1509_s23, %s1132_s5  ;;  %s1286_s13 = smov [#allocation11]  }
  0x67   : > { %s1136_s21 = sshll.u32 %s1286_s13, 4  ;;  %s1137_s21 = int_to_ptr.vmem [resolvable:$false] %s1136_s21 }
  0x68   : > { %p1134_p9 = pnand %p1133_p1, %p1432_p5  ;;  %p1139_p2 = scmp.lt.s32.totalorder %s1509_s23, %s1137_s21 }
  0x6a   : > { %p1135_p13 = pneg %p1134_p9 }
  0xea   : > { %v411_v2 = vpop.xlane.xlu0 %410 }
  0xeb   : > { %v413_v3 = vmul.f32 0.03125, %v411_v2 }
  0xed   : > { %v414_v4 = vsub.f32 %v405_v0, %v413_v3 }
  0xef   : > { %v415_v5 = vmul.f32 %v414_v4, %v414_v4 }
  0xf1   : > { %v416_v6 = vsel %vm408_vm0, %v415_v5, 0.0 }
  0xf2   : > { %417 = vadd.xlane.f32.xlu0 %v416_v6 }
 0x17b   : > { %v418_v12 = vpop.xlane.xlu0 %417 }
 0x17c   : > { %v419_v13 = vmul.f32 0.03125, %v418_v12 }
 0x17e   : > { %v420_v14 = vadd.f32 1e-05, %v419_v13 }
 0x180   : > { %1024 = vrsqrt.f32 %v420_v14 }
 0x18d   : > { %v1025_v15 = vpop.eup %1024 }
 0x18e   : > { %v422_v17 = vmul.f32 %v1025_v15, %v414_v4 }
 0x190   : > { %v429_v19 = vmul.f32 %v859_v16, %v422_v17 }
 0x192   : > { %v436_v20 = vadd.f32 %v860_v18, %v429_v19 }
 0x194   : > { %v437_v22 = vpack.c.bf16 %v436_v20, %v436_v20 }
 0x196   : > { %892 = vmatmul.mubr.msk.bf16.vlgmr.msra.gmra.mxu0 %vm408_vm0, %v437_v22  ;;  %900 = vmatmul.mubr.msk.bf16.vlgmr.msra.gmra.mxu1 %vm408_vm0, %v437_v22 }
 0x197   : > { %904 = vmatpush3.bf16.msra.mxu0 %v1022_v21  ;;  %907 = vmatprep.mubr.msk.bf16.mxu0 %vm1285_vm1, %v1284_v9 }
 0x198   : > { %905 = vmatprep.subr.bf16.mxu0 %v1284_v9 }
 0x19b   : > { %906 = vmatpush3.bf16.msra.mxu0 %v1023_v23 }
 0x19e   : > { %908 = vmatmul.mubr.msk.bf16.vlgmr.msra.gmra.mxu0 %vm408_vm0, %v437_v22 }
 0x256   : > { %v491_v24 = vpop.f32.mrf.mxu0  ;;  %v551_v25 = vpop.f32.mrf.mxu1 }
 0x257   : > { %v497_v26 = vmul.f32 0.17677669, %v491_v24  ;;  %v557_v27 = vpack.c.bf16 %v551_v25, %v551_v25 }
 0x258   : > { %v893_v28 = vpop.f32.mrf.mxu0  ;;  %v901_v29 = vpop.f32.mrf.mxu1 }
 0x259   : > { %v498_v30 = vpack.c.bf16 %v497_v26, %v497_v26  ;;  %558 = vst.msk [vmem:[%s396_s16] sm:$0xf] %vm499_vm2, %v557_v27  ;;  %s1138_s16 = scalar_lea.vmem %s1137_s21, 128 }
 0x25a   : > { %v494_v31 = vpop.f32.mrf.mxu0  ;;  %v554_v32 = vpop.f32.mrf.mxu1  ;;  %p1140_p4 = scmp.lt.s32.totalorder %s1138_s16, %s1132_s5 }
 0x25c   : > { %p1141_p6 = por %p1140_p4, %p1139_p2 }
 0x25e   : > { %p1142_p12 = pnand %p1141_p6, %p1135_p13 }
 0x260   : > { %1145 = shalt.err (!%p1142_p12)
}
 0x261   : > { %s1146_s19 = scalar_lea.hbm %s1507_s17, 64  ;;  %s1150_s11 = scalar_lea.hbm %s1631_s7, 128 }
 0x262   : > { %p1147_p0 = scmp.ne.s32.totalorder %s1507_s17, %s1146_s19  ;;  %p1151_p7 = scmp.lt.s32.totalorder %s1507_s17, %s1631_s7 }
 0x263   : > { %p1152_p8 = scmp.lt.s32.totalorder %s1150_s11, %s1146_s19 }
 0x264   : > { %p1148_p3 = pnand %p1147_p0, %p1432_p5 }
 0x265   : > { %p1153_p11 = por %p1152_p8, %p1151_p7 }
 0x266   : > { %p1149_p10 = pneg %p1148_p3 }
 0x268   : > { %p1154_p1 = pnand %p1153_p11, %p1149_p10 }
 0x26a   : > { %1157 = shalt.err (!%p1154_p1)
}
 0x26b   : > { %926 = dma.vmem_to_hbm [thread:$0]  (%p1432_p5), %s1509_s23, 64, %s1507_s17, %s1520_s4   ;;  %v894_v33 = vpop.f32.mrf.mxu0  ;;  %v902_v34 = vpop.f32.mrf.mxu1 }
 0x26c   : > { %s1657_s20 = scalar_lea.vmem [#allocation10], %s1493_s15  ;;  %s403_s5 = scalar_lea.vmem [#allocation13], %s1493_s15 }
 0x26d   : > { %500 = vst.msk [vmem:[%s1657_s20] sm:$0xf] %vm499_vm2, %v498_v30  ;;  %s1549_s21 = sshll.u32 %s403_s5, 4  ;;  %s618_s16 = scalar_lea.sflag [#allocation4], %s1462_s12  ;;  %s671_s21 = int_to_ptr.vmem [resolvable:$true] %s1549_s21 }
 0x26e   : > { %s1158_s19 = scalar_lea.vmem %s1518_s24, 64  ;;  %s1287_s22 = smov [#allocation10]  }
 0x26f   : > { %p1159_p9 = scmp.ne.s32.totalorder %s1518_s24, %s1158_s19  ;;  %s1162_s30 = sshll.u32 %s1287_s22, 4  ;;  %s1163_s30 = int_to_ptr.vmem [resolvable:$false] %s1162_s30 }
 0x270   : > { %s1164_s11 = scalar_lea.vmem %s1163_s30, 128  ;;  %p1165_p4 = scmp.lt.s32.totalorder %s1518_s24, %s1163_s30 }
 0x271   : > { %p1160_p13 = pnand %p1159_p9, %p1432_p5  ;;  %p1166_p6 = scmp.lt.s32.totalorder %s1164_s11, %s1158_s19 }
 0x273   : > { %p1161_p2 = pneg %p1160_p13  ;;  %p1167_p12 = por %p1166_p6, %p1165_p4 }
 0x275   : > { %p1168_p0 = pnand %p1167_p12, %p1161_p2 }
 0x277   : > { %1171 = shalt.err (!%p1168_p0)
}
 0x278   : > { %s1172_s23 = scalar_lea.hbm %s1516_s3, 64  ;;  %s1176_s13 = scalar_lea.hbm %s1630_s6, 128 }
 0x279   : > { %p1173_p3 = scmp.ne.s32.totalorder %s1516_s3, %s1172_s23  ;;  %p1177_p8 = scmp.lt.s32.totalorder %s1516_s3, %s1630_s6 }
 0x27a   : > { %p1178_p11 = scmp.lt.s32.totalorder %s1176_s13, %s1172_s23 }
 0x27b   : > { %p1174_p10 = pnand %p1173_p3, %p1432_p5 }
 0x27c   : > { %p1179_p1 = por %p1178_p11, %p1177_p8 }
 0x27d   : > { %p1175_p7 = pneg %p1174_p10 }
 0x27f   : > { %p1180_p9 = pnand %p1179_p1, %p1175_p7 }
 0x281   : > { %1183 = shalt.err (!%p1180_p9)
}
 0x282   : > { %925 = dma.vmem_to_hbm [thread:$0]  (%p1432_p5), %s1518_s24, 64, %s1516_s3, %s618_s16   ;;  %v609_v35 = vpop.f32.mrf.mxu0 }
 0x283   : > { %v615_v36 = vpack.c.bf16 %v609_v35, %v609_v35  ;;  %s1576_s11 = scalar_lea.hbm %s1632_s8, %s1497_s26  ;;  %s1184_s23 = scalar_lea.vmem %s671_s21, 64 }
 0x284   : > { %v909_v37 = vpop.f32.mrf.mxu0  ;;  %p1185_p13 = scmp.ne.s32.totalorder %s671_s21, %s1184_s23  ;;  %s1288_s12 = smov [#allocation13]  }
 0x285   : > { %616 = vst.msk [vmem:[%s403_s5] sm:$0xf] %vm499_vm2, %v615_v36  ;;  %s1188_s24 = sshll.u32 %s1288_s12, 4  ;;  %s1189_s24 = int_to_ptr.vmem [resolvable:$false] %s1188_s24 }
 0x286   : > { %v612_v38 = vpop.f32.mrf.mxu0  ;;  %p1186_p2 = pnand %p1185_p13, %p1432_p5  ;;  %s1190_s3 = scalar_lea.vmem %s1189_s24, 128 }
 0x287   : > { %p1191_p6 = scmp.lt.s32.totalorder %s671_s21, %s1189_s24  ;;  %p1192_p12 = scmp.lt.s32.totalorder %s1190_s3, %s1184_s23 }
 0x288   : > { %p1187_p4 = pneg %p1186_p2 }
 0x289   : > { %p1193_p0 = por %p1192_p12, %p1191_p6 }
 0x28b   : > { %p1194_p3 = pnand %p1193_p0, %p1187_p4 }
 0x28d   : > { %1197 = shalt.err (!%p1194_p3)
}
 0x28e   : > { %s1198_s15 = scalar_lea.hbm %s1576_s11, 64  ;;  %s1202_s16 = scalar_lea.hbm %s1632_s8, 128 }
 0x28f   : > { %p1199_p10 = scmp.ne.s32.totalorder %s1576_s11, %s1198_s15  ;;  %p1203_p11 = scmp.lt.s32.totalorder %s1576_s11, %s1632_s8 }
 0x290   : > { %p1204_p1 = scmp.lt.s32.totalorder %s1202_s16, %s1198_s15 }
 0x291   : > { %p1200_p7 = pnand %p1199_p10, %p1432_p5 }
 0x292   : > { %p1205_p9 = por %p1204_p1, %p1203_p11 }
 0x293   : > { %p1201_p8 = pneg %p1200_p7 }
 0x295   : > { %p1206_p13 = pnand %p1205_p9, %p1201_p8 }
 0x297   : > { %1209 = shalt.err (!%p1206_p13)
}
 0x298   : > { %927 = dma.vmem_to_hbm [thread:$0]  (%p1432_p5), %s671_s21, 64, %s1576_s11, %s1520_s4   ;;  %v910_v39 = vpop.f32.mrf.mxu0 }
 0x299 PF: > { %s682_s20 = sand.u32 1, %s1256_s27   ;;  %p1658_p2 = scmp.ne.s32.totalorder %s1642_s14, 0 }
 0x29a   : > { %p1659_p4 = scmp.ge.s32.totalorder %s1276_s10, 2  ;;  %s683_s22 = scalar_lea.sflag [#allocation4], %s682_s20 }
 0x29c   : > { %p946_p6 = pnand %p1659_p4, %p1658_p2 }
 0x29e   : > { %p947_p12 = pneg %p946_p6 }
 0x2a0   : > { %1247 = dma.done.wait (%p947_p12), %s683_s22, 64  }
 0x2a1   : > { %1249 = vsyncadd (%p947_p12), %s683_s22, 4294967232  ;;  %s1660_s19 = sadd.s32 4294967294, %s1276_s10  }
 0x2a2   : > { %s691_s30 = sand.u32 1, %s1660_s19  }
 0x2a3   : > { %s692_s18 = scalar_lea.sflag [#allocation12], %s691_s30 }
 0x2a4   : > { %1251 = dma.done.wait (%p947_p12), %s692_s18, 128  }
 0x2a5   : > { %1253 = vsyncadd (%p947_p12), %s692_s18, 4294967168  ;;  %s30_s10 = sadd.s32 1, %s1276_s10   ;;  %s1661_s14 = sld [smem:[#allocation19_spill]] }
 0x2a6   : > { %p27_p5 = scmp.ge.s32.totalorder %s30_s10, 4   ;;  %s1662_s27 = smov %s1260_s28 }
 0x2a7   : > { %s1663_s28 = smov %s1264_s29  ;;  %s1664_s29 = smov %s1444_s25 }
 0x2a8   : > { %s1665_s30 = smov %s1272_s9  ;;  %29 = sbr.rel (!%p27_p5) target bundleno = 14 (0xe), region = 133 }
 0x2ab   : > { %s1666_s9 = smov %s1661_s14 }
 0x2ad   :  { %706 = vsyncpa [#allocation3], 1 }
 0x2ae   :  { %708 = vsyncpa [#allocation3 + $0x1], 1 }
 0x2af   :  { %709 = vsyncpa [#allocation6], 1 }
 0x2b0   :  { %710 = vsyncpa [#allocation9], 1 }
 0x2b1   :  { %711 = vsyncpa [#allocation4], 1 }
 0x2b2   :  { %713 = vsyncpa [#allocation4 + $0x1], 1 }
 0x2b3   :  { %714 = vsyncpa [#allocation12], 1 }
 0x2b4   :  { %716 = vsyncpa [#allocation12 + $0x1], 1 }

// kernel: tpu_custom_call.1
= control target key start
LH: loop header
LB: loop body
LE: loop exit
PB: predicated region body
PF: predicated region fallthrough
CT: control target
= control target key end

     0   :  { %s1624_s0 = inlined_call_operand.hbm [shape: f32[2,8,32], index: 0, kind: input, shape index: {}]   ;;  %s1625_s1 = inlined_call_operand.vmem [shape: f32[1,32], index: 1, kind: input, shape index: {}]   ;;  %s1626_s2 = inlined_call_operand.vmem [shape: f32[1,32], index: 2, kind: input, shape index: {}]   ;;  %s1627_s3 = inlined_call_operand.hbm [shape: bf16[32,32], index: 3, kind: input, shape index: {}]   ;;  %s1628_s4 = inlined_call_operand.hbm [shape: bf16[32,32], index: 4, kind: input, shape index: {}]   ;;  %s1629_s5 = inlined_call_operand.hbm [shape: bf16[32,32], index: 5, kind: input, shape index: {}]   ;;  %s1630_s6 = inlined_call_operand.hbm [shape: bf16[2,8,32], index: 6, kind: output, shape index: {0}]   ;;  %s1631_s7 = inlined_call_operand.hbm [shape: bf16[2,8,32], index: 7, kind: output, shape index: {1}]   ;;  %s1632_s8 = inlined_call_operand.hbm [shape: bf16[2,8,32], index: 8, kind: output, shape index: {2}]  }
   0x1   :  { %1638 = sst [smem:[#allocation20_spill]] %s1627_s3 }
   0x2   :  { %1639 = sst [smem:[#allocation21_spill]] %s1628_s4 }
   0x3   :  { %1640 = sst [smem:[#allocation22_spill]] %s1629_s5 }
   0x4   :  { %14 = vsyncpa [#allocation3], 0 }
   0x5   :  { %16 = vsyncpa [#allocation3 + $0x1], 0 }
   0x6   :  { %17 = vsyncpa [#allocation6], 0 }
   0x7   :  { %18 = vsyncpa [#allocation9], 0 }
   0x8   :  { %19 = vsyncpa [#allocation4], 0 }
   0x9   :  { %21 = vsyncpa [#allocation4 + $0x1], 0 }
   0xa   :  { %22 = vsyncpa [#allocation12], 0 }
   0xb   :  { %24 = vsyncpa [#allocation12 + $0x1], 0  ;;  %s1334_s27 = smov 0   ;;  %s1336_s28 = smov 0  }
   0xc   :  { %s1338_s29 = smov 0   ;;  %s1340_s30 = smov 0  }
   0xd   :  { %s1342_s9 = smov 0   ;;  %s1344_s10 = smov 0  }
   0xe LB: > { %s1365_s11 = sadd.s32 4294967295, %s1276_s10   ;;  %s1635_s12 = sadd.s32 4294967294, %s1276_s10   ;;  %s1276_s10 = sphi %s1344_s10, %s30_s10   ;;  %s1272_s9 = sphi %s1342_s9, %s1666_s9   ;;  %s1268_s30 = sphi %s1340_s30, %s1665_s30   ;;  %s1264_s29 = sphi %s1338_s29, %s1664_s29   ;;  %s1260_s28 = sphi %s1336_s28, %s1663_s28   ;;  %s1256_s27 = sphi %s1334_s27, %s1662_s27  }
   0xf   : > { %p64_p0 = scmp.ne.s32.totalorder %s1260_s28, %s1256_s27  ;;  %p1633_p1 = scmp.eq.s32.totalorder %s1365_s11, 0 }
  0x10   : > { %p201_p3 = scmp.eq.s32.totalorder %s1635_s12, 1  ;;  %p844_p5 = scmp.ge.s32.totalorder %s1276_s10, 1 }
  0x11   : > { %p1376_p4 = por %p1633_p1, %p64_p0  ;;  %p264_p7 = scmp.lt.s32.totalorder %s1276_s10, 3 }
  0x12   : > { %p1381_p6 = por %p201_p3, %p64_p0  ;;  %s1278_s16 = smov [#allocation5]  }
  0x13   : > { %s1641_s13 = scalar_select %p1376_p4, 1, 0 }
  0x14   : > { %s1642_s14 = scalar_select %p1381_p6, 1, 0 }
  0x15   : > { %p1386_p8 = pnand %p844_p5, %p264_p7  ;;  %s282_s17 = sshll.u32 %s1278_s16, 4  ;;  %s283_s17 = int_to_ptr.vmem [resolvable:$true] %s282_s17 }
  0x16   : > { %s1279_s19 = smov [#allocation7]   ;;  %s1280_s21 = smov [#allocation8]  }
  0x17   : > { %p931_p9 = pneg %p1386_p8  ;;  %s295_s20 = sshll.u32 %s1279_s19, 4  ;;  %s296_s20 = int_to_ptr.vmem [resolvable:$true] %s295_s20 }
  0x18   : > { %s308_s22 = sshll.u32 %s1280_s21, 4  ;;  %s1037_s23 = scalar_lea.vmem %s283_s17, 256  ;;  %s309_s22 = int_to_ptr.vmem [resolvable:$true] %s308_s22 }
  0x19   : > { %p1395_p11 = pnand %p931_p9, %p1633_p1  ;;  %p1038_p13 = scmp.ne.s32.totalorder %s283_s17, %s1037_s23 }
  0x1a   : > { %p1045_p5 = scmp.lt.s32.totalorder %s283_s17, %s283_s17  ;;  %p1046_p7 = scmp.lt.s32.totalorder %s1037_s23, %s1037_s23 }
  0x1b   : > { %p1028_p12 = pneg %p1395_p11 }
  0x1c   : > { %p1047_p9 = por %p1046_p7, %p1045_p5 }
  0x1d   : > { %p1040_p0 = pnand %p1038_p13, %p1028_p12 }
  0x1f   : > { %p1041_p3 = pneg %p1040_p0 }
  0x21   : > { %p1048_p10 = pnand %p1047_p9, %p1041_p3 }
  0x23   : > { %1051 = shalt.err (!%p1048_p10)
}
  0x24   : > { %s1281_s24 = smov 64   ;;  %s1282_s25 = smov 4  }
  0x25   : > { %s1645_s3 = sld [smem:[#allocation20_spill]]  ;;  %s1063_s19 = scalar_lea.vmem %s296_s20, 256 }
  0x26   : > { %p1064_p1 = scmp.ne.s32.totalorder %s296_s20, %s1063_s19  ;;  %p1071_p2 = scmp.lt.s32.totalorder %s296_s20, %s296_s20 }
  0x27   : > { %p1072_p6 = scmp.lt.s32.totalorder %s1063_s19, %s1063_s19 }
  0x28   : > { %p1066_p13 = pnand %p1064_p1, %p1028_p12 }
  0x29   : > { %p1073_p5 = por %p1072_p6, %p1071_p2 }
  0x2a   : > { %p1067_p0 = pneg %p1066_p13 }
  0x2b   : > { %934 = dma.hbm_to_vmem [thread:$0]  (!%p1395_p11), %s1645_s3, 256, %s283_s17, [#allocation6], %s1281_s24, %s1281_s24, %s1282_s25  }
  0x2c   : > { %p1074_p3 = pnand %p1073_p5, %p1067_p0 }
  0x2e   : > { %1077 = shalt.err (!%p1074_p3)
}
  0x2f   : > { %s1646_s4 = sld [smem:[#allocation21_spill]]  ;;  %s1089_s17 = scalar_lea.vmem %s309_s22, 256 }
  0x30   : > { %p1090_p10 = scmp.ne.s32.totalorder %s309_s22, %s1089_s17  ;;  %p1097_p9 = scmp.lt.s32.totalorder %s309_s22, %s309_s22 }
  0x31   : > { %p1098_p13 = scmp.lt.s32.totalorder %s1089_s17, %s1089_s17 }
  0x32   : > { %p1092_p7 = pnand %p1090_p10, %p1028_p12 }
  0x33   : > { %p1099_p4 = por %p1098_p13, %p1097_p9 }
  0x34   : > { %p1093_p1 = pneg %p1092_p7 }
  0x35   : > { %937 = dma.hbm_to_vmem [thread:$0]  (!%p1395_p11), %s1646_s4, 256, %s296_s20, [#allocation6], %s1281_s24, %s1281_s24, %s1282_s25  }
  0x36   : > { %p1100_p2 = pnand %p1099_p4, %p1093_p1 }
  0x38   : > { %1103 = shalt.err (!%p1100_p2)
}
  0x39   : > { %s1647_s5 = sld [smem:[#allocation22_spill]]  ;;  %s51_s20 = sadd.s32 1, %s1264_s29 }
  0x3a   : > { %s42_s19 = sadd.s32 1, %s1272_s9  ;;  %p58_p4 = scmp.ne.s32.totalorder %s1264_s29, %s1260_s28 }
  0x3b   : > { %p44_p6 = scmp.ge.s32.totalorder %s42_s19, 2  ;;  %p59_p12 = scmp.eq.s32.totalorder %s1276_s10, 0 }
  0x3c   : > { %p1648_p0 = scmp.eq.s32.totalorder %s1365_s11, 1  ;;  %p958_p3 = scmp.lt.s32.totalorder %s1276_s10, 2 }
  0x3d   : > { %s1668_s19 = smov (%p44_p6, %s42_s19), 0  ;;  %p60_p10 = por %p59_p12, %p58_p4 }
  0x3e   : > { %p1432_p5 = por %p1648_p0, %p58_p4  ;;  %1650 = sst [smem:[#allocation19_spill]] %s1668_s19 }
  0x3f   : > { %940 = dma.hbm_to_vmem [thread:$0]  (!%p1395_p11), %s1647_s5, 256, %s309_s22, [#allocation9], %s1281_s24, %s1281_s24, %s1282_s25  }
  0x40   : > { %s322_s21 = sand.u32 1, %s1264_s29   ;;  %s46_s23 = ssub.s32 %s1272_s9, %s1668_s19 }
  0x41   : > { %p49_p7 = scmp.eq.s32.totalorder %s46_s23, 0  ;;  %s849_s22 = sshll.u32 %s322_s21, 3 }
  0x42   : > { %s850_s24 = sshll.u32 %s1272_s9, 7  ;;  %s326_s12 = scalar_lea.vmem [#allocation2], %s849_s22 }
  0x43   : > { %s1444_s25 = scalar_select %p49_p7, %s1264_s29, %s51_s20  }
  0x44   : > { %s332_s16 = scalar_lea.hbm %s1624_s0, %s850_s24  ;;  %s334_s3 = sshll.u32 %s326_s12, 4  ;;  %s335_s3 = int_to_ptr.vmem [resolvable:$true] %s334_s3 }
  0x45   : > { %p1451_p11 = pnand %p958_p3, %p60_p10  ;;  %s323_s5 = scalar_lea.sflag [#allocation3], %s322_s21 }
  0x46   : > { %s1117_s23 = scalar_lea.vmem %s335_s3, 128  ;;  %s1283_s20 = smov [#allocation2]  }
  0x47   : > { %p1106_p1 = pneg %p1451_p11  ;;  %p1118_p9 = scmp.ne.s32.totalorder %s335_s3, %s1117_s23 }
  0x48   : > { %s1122_s19 = sshll.u32 %s1283_s20, 4  ;;  %s1123_s19 = int_to_ptr.vmem [resolvable:$false] %s1122_s19 }
  0x49   : > { %p1120_p13 = pnand %p1118_p9, %p1106_p1  ;;  %s1124_s24 = scalar_lea.vmem %s1123_s19, 256 }
  0x4a   : > { %p1125_p4 = scmp.lt.s32.totalorder %s335_s3, %s1123_s19  ;;  %p1126_p6 = scmp.lt.s32.totalorder %s1124_s24, %s1117_s23 }
  0x4b   : > { %p1121_p2 = pneg %p1120_p13 }
  0x4c   : > { %p1127_p12 = por %p1126_p6, %p1125_p4 }
  0x4e   : > { %p1128_p0 = pnand %p1127_p12, %p1121_p2 }
  0x50   : > { %1131 = shalt.err (!%p1128_p0)
}
  0x51   : > { %944 = dma.hbm_to_vmem [thread:$0]  (!%p1451_p11), %s332_s16, 128, %s335_s3, %s323_s5  }
  0x52   : > { %343 = sbr.rel (%p1386_p8) target bundleno = 665 (0x299), region = 44  ;;  %s1462_s12 = sand.u32 (!%p1386_p8), 1, %s1260_s28  }
  0x53   : > { %s852_s21 = sshll.u32 (!%p1386_p8), %s1462_s12, 3  ;;  %s346_s22 = scalar_lea.sflag (!%p1386_p8), [#allocation3], %s1462_s12 }
  0x54   : > { %s349_s17 = scalar_lea.vmem (!%p1386_p8), [#allocation2], %s852_s21  ;;  %p1652_p3 = scmp.ne.s32.totalorder (!%p1386_p8), %s1641_s13, 0 }
  0x57   : > { %1235 = dma.done.wait (%p1652_p3), %s346_s22, 128  }
  0x58   : > { %1237 = vsyncadd (%p1652_p3), %s346_s22, 4294967168  ;;  %p1653_p10 = scmp.eq.s32.totalorder %s1365_s11, 0 }
  0x5a   : > { %1239 = dma.done.wait (%p1653_p10), [#allocation6], 512   ;;  %p1654_p7 = pmov %p1653_p10 }
  0x5c   : > { %1241 = vsyncadd (%p1654_p7), [#allocation6], 4294966784  ;;  %p1655_p8 = pmov %p1654_p7 }
  0x5d   : > { %p1656_p11 = pmov %p1654_p7 }
  0x5e   : > { %1243 = dma.done.wait (%p1655_p8), [#allocation9], 256  }
  0x5f   : > { %1245 = vsyncadd (%p1656_p11), [#allocation9], 4294967040  ;;  %vm408_vm0 = vcmask 261120   ;;  %v405_v0 = vld [vmem:[%s349_s17] sm:$0xff]  ;;  %v1018_v7 = vld [vmem:[#allocation5 + $0x8] sm:$0xff]   ;;  %v1284_v9 = vmov 0.0  }
  0x60   : > { %v409_v1 = vsel %vm408_vm0, %v405_v0, 0.0  ;;  %v1019_v8 = vld [vmem:[#allocation7 + $0x8] sm:$0xff]   ;;  %887 = vmatprep.subr.bf16.mxu0 %v1284_v9  ;;  %895 = vmatprep.subr.bf16.mxu1 %v1284_v9  ;;  %v1020_v10 = vld [vmem:[#allocation5] sm:$0xff]   ;;  %v1021_v11 = vld [vmem:[#allocation7] sm:$0xff]   ;;  %vm1285_vm1 = vmmov 0   ;;  %s1493_s15 = sshll.u32 %s1462_s12, 2 }
  0x61   : > { %410 = vadd.xlane.f32.xlu0 %v409_v1  ;;  %888 = vmatpush3.bf16.msra.mxu0 %v1018_v7  ;;  %v859_v16 = vld [vmem:[%s1625_s1] ss:$0 sm:$0xff]  ;;  %v1022_v21 = vld [vmem:[#allocation8 + $0x8] sm:$0xff]   ;;  %v1023_v23 = vld [vmem:[#allocation8] sm:$0xff]   ;;  %s622_s19 = sand.u32 1, %s1365_s11   ;;  %s1497_s26 = sshll.u32 %s1268_s30, 6 }
  0x62   : > { %896 = vmatpush3.bf16.msra.mxu1 %v1019_v8  ;;  %889 = vmatprep.subr.bf16.mxu0 %v1284_v9  ;;  %v860_v18 = vld [vmem:[%s1626_s2] ss:$0 sm:$0xff]  ;;  %s396_s16 = scalar_lea.vmem [#allocation11], %s1493_s15  ;;  %vm499_vm2 = vcmask 257024   ;;  %s1637_s20 = scalar_lea.vmem [#allocation10], %s1493_s15 }
  0x63   : > { %897 = vmatprep.subr.bf16.mxu1 %v1284_v9  ;;  %891 = vmatprep.mubr.msk.bf16.mxu0 %vm1285_vm1, %v1284_v9  ;;  %s656_s23 = sshll.u32 %s396_s16, 4  ;;  %s642_s24 = sshll.u32 %s1637_s20, 4  ;;  %s1509_s23 = int_to_ptr.vmem [resolvable:$true] %s656_s23  ;;  %s1518_s24 = int_to_ptr.vmem [resolvable:$true] %s642_s24 }
  0x64   : > { %899 = vmatprep.mubr.msk.bf16.mxu1 %vm1285_vm1, %v1284_v9  ;;  %s1507_s17 = scalar_lea.hbm %s1631_s7, %s1497_s26  ;;  %s1516_s3 = scalar_lea.hbm %s1630_s6, %s1497_s26 }
  0x65   : > { %890 = vmatpush3.bf16.msra.mxu0 %v1020_v10  ;;  %s1520_s4 = scalar_lea.sflag [#allocation12], %s622_s19  ;;  %s1132_s5 = scalar_lea.vmem %s1509_s23, 64 }
  0x66   : > { %898 = vmatpush3.bf16.msra.mxu1 %v1021_v11  ;;  %903 = vmatprep.subr.bf16.mxu0 %v1284_v9  ;;  %p1133_p1 = scmp.ne.s32.totalorder %s1509_s23, %s1132_s5  ;;  %s1286_s13 = smov [#allocation11]  }
  0x67   : > { %s1136_s21 = sshll.u32 %s1286_s13, 4  ;;  %s1137_s21 = int_to_ptr.vmem [resolvable:$false] %s1136_s21 }
  0x68   : > { %p1134_p9 = pnand %p1133_p1, %p1432_p5  ;;  %p1139_p2 = scmp.lt.s32.totalorder %s1509_s23, %s1137_s21 }
  0x6a   : > { %p1135_p13 = pneg %p1134_p9 }
  0xea   : > { %v411_v2 = vpop.xlane.xlu0 %410 }
  0xeb   : > { %v413_v3 = vmul.f32 0.03125, %v411_v2 }
  0xed   : > { %v414_v4 = vsub.f32 %v405_v0, %v413_v3 }
  0xef   : > { %v415_v5 = vmul.f32 %v414_v4, %v414_v4 }
  0xf1   : > { %v416_v6 = vsel %vm408_vm0, %v415_v5, 0.0 }
  0xf2   : > { %417 = vadd.xlane.f32.xlu0 %v416_v6 }
 0x17b   : > { %v418_v12 = vpop.xlane.xlu0 %417 }
 0x17c   : > { %v419_v13 = vmul.f32 0.03125, %v418_v12 }
 0x17e   : > { %v420_v14 = vadd.f32 1e-05, %v419_v13 }
 0x180   : > { %1024 = vrsqrt.f32 %v420_v14 }
 0x18d   : > { %v1025_v15 = vpop.eup %1024 }
 0x18e   : > { %v422_v17 = vmul.f32 %v1025_v15, %v414_v4 }
 0x190   : > { %v429_v19 = vmul.f32 %v859_v16, %v422_v17 }
 0x192   : > { %v436_v20 = vadd.f32 %v860_v18, %v429_v19 }
 0x194   : > { %v437_v22 = vpack.c.bf16 %v436_v20, %v436_v20 }
 0x196   : > { %892 = vmatmul.mubr.msk.bf16.vlgmr.msra.gmra.mxu0 %vm408_vm0, %v437_v22  ;;  %900 = vmatmul.mubr.msk.bf16.vlgmr.msra.gmra.mxu1 %vm408_vm0, %v437_v22 }
 0x197   : > { %904 = vmatpush3.bf16.msra.mxu0 %v1022_v21  ;;  %907 = vmatprep.mubr.msk.bf16.mxu0 %vm1285_vm1, %v1284_v9 }
 0x198   : > { %905 = vmatprep.subr.bf16.mxu0 %v1284_v9 }
 0x19b   : > { %906 = vmatpush3.bf16.msra.mxu0 %v1023_v23 }
 0x19e   : > { %908 = vmatmul.mubr.msk.bf16.vlgmr.msra.gmra.mxu0 %vm408_vm0, %v437_v22 }
 0x256   : > { %v491_v24 = vpop.f32.mrf.mxu0  ;;  %v551_v25 = vpop.f32.mrf.mxu1 }
 0x257   : > { %v497_v26 = vmul.f32 0.17677669, %v491_v24  ;;  %v557_v27 = vpack.c.bf16 %v551_v25, %v551_v25 }
 0x258   : > { %v893_v28 = vpop.f32.mrf.mxu0  ;;  %v901_v29 = vpop.f32.mrf.mxu1 }
 0x259   : > { %v498_v30 = vpack.c.bf16 %v497_v26, %v497_v26  ;;  %558 = vst.msk [vmem:[%s396_s16] sm:$0xf] %vm499_vm2, %v557_v27  ;;  %s1138_s16 = scalar_lea.vmem %s1137_s21, 128 }
 0x25a   : > { %v494_v31 = vpop.f32.mrf.mxu0  ;;  %v554_v32 = vpop.f32.mrf.mxu1  ;;  %p1140_p4 = scmp.lt.s32.totalorder %s1138_s16, %s1132_s5 }
 0x25c   : > { %p1141_p6 = por %p1140_p4, %p1139_p2 }
 0x25e   : > { %p1142_p12 = pnand %p1141_p6, %p1135_p13 }
 0x260   : > { %1145 = shalt.err (!%p1142_p12)
}
 0x261   : > { %s1146_s19 = scalar_lea.hbm %s1507_s17, 64  ;;  %s1150_s11 = scalar_lea.hbm %s1631_s7, 128 }
 0x262   : > { %p1147_p0 = scmp.ne.s32.totalorder %s1507_s17, %s1146_s19  ;;  %p1151_p7 = scmp.lt.s32.totalorder %s1507_s17, %s1631_s7 }
 0x263   : > { %p1152_p8 = scmp.lt.s32.totalorder %s1150_s11, %s1146_s19 }
 0x264   : > { %p1148_p3 = pnand %p1147_p0, %p1432_p5 }
 0x265   : > { %p1153_p11 = por %p1152_p8, %p1151_p7 }
 0x266   : > { %p1149_p10 = pneg %p1148_p3 }
 0x268   : > { %p1154_p1 = pnand %p1153_p11, %p1149_p10 }
 0x26a   : > { %1157 = shalt.err (!%p1154_p1)
}
 0x26b   : > { %926 = dma.vmem_to_hbm [thread:$0]  (%p1432_p5), %s1509_s23, 64, %s1507_s17, %s1520_s4   ;;  %v894_v33 = vpop.f32.mrf.mxu0  ;;  %v902_v34 = vpop.f32.mrf.mxu1 }
 0x26c   : > { %s1657_s20 = scalar_lea.vmem [#allocation10], %s1493_s15  ;;  %s403_s5 = scalar_lea.vmem [#allocation13], %s1493_s15 }
 0x26d   : > { %500 = vst.msk [vmem:[%s1657_s20] sm:$0xf] %vm499_vm2, %v498_v30  ;;  %s1549_s21 = sshll.u32 %s403_s5, 4  ;;  %s618_s16 = scalar_lea.sflag [#allocation4], %s1462_s12  ;;  %s671_s21 = int_to_ptr.vmem [resolvable:$true] %s1549_s21 }
 0x26e   : > { %s1158_s19 = scalar_lea.vmem %s1518_s24, 64  ;;  %s1287_s22 = smov [#allocation10]  }
 0x26f   : > { %p1159_p9 = scmp.ne.s32.totalorder %s1518_s24, %s1158_s19  ;;  %s1162_s30 = sshll.u32 %s1287_s22, 4  ;;  %s1163_s30 = int_to_ptr.vmem [resolvable:$false] %s1162_s30 }
 0x270   : > { %s1164_s11 = scalar_lea.vmem %s1163_s30, 128  ;;  %p1165_p4 = scmp.lt.s32.totalorder %s1518_s24, %s1163_s30 }
 0x271   : > { %p1160_p13 = pnand %p1159_p9, %p1432_p5  ;;  %p1166_p6 = scmp.lt.s32.totalorder %s1164_s11, %s1158_s19 }
 0x273   : > { %p1161_p2 = pneg %p1160_p13  ;;  %p1167_p12 = por %p1166_p6, %p1165_p4 }
 0x275   : > { %p1168_p0 = pnand %p1167_p12, %p1161_p2 }
 0x277   : > { %1171 = shalt.err (!%p1168_p0)
}
 0x278   : > { %s1172_s23 = scalar_lea.hbm %s1516_s3, 64  ;;  %s1176_s13 = scalar_lea.hbm %s1630_s6, 128 }
 0x279   : > { %p1173_p3 = scmp.ne.s32.totalorder %s1516_s3, %s1172_s23  ;;  %p1177_p8 = scmp.lt.s32.totalorder %s1516_s3, %s1630_s6 }
 0x27a   : > { %p1178_p11 = scmp.lt.s32.totalorder %s1176_s13, %s1172_s23 }
 0x27b   : > { %p1174_p10 = pnand %p1173_p3, %p1432_p5 }
 0x27c   : > { %p1179_p1 = por %p1178_p11, %p1177_p8 }
 0x27d   : > { %p1175_p7 = pneg %p1174_p10 }
 0x27f   : > { %p1180_p9 = pnand %p1179_p1, %p1175_p7 }
 0x281   : > { %1183 = shalt.err (!%p1180_p9)
}
 0x282   : > { %925 = dma.vmem_to_hbm [thread:$0]  (%p1432_p5), %s1518_s24, 64, %s1516_s3, %s618_s16   ;;  %v609_v35 = vpop.f32.mrf.mxu0 }
 0x283   : > { %v615_v36 = vpack.c.bf16 %v609_v35, %v609_v35  ;;  %s1576_s11 = scalar_lea.hbm %s1632_s8, %s1497_s26  ;;  %s1184_s23 = scalar_lea.vmem %s671_s21, 64 }
 0x284   : > { %v909_v37 = vpop.f32.mrf.mxu0  ;;  %p1185_p13 = scmp.ne.s32.totalorder %s671_s21, %s1184_s23  ;;  %s1288_s12 = smov [#allocation13]  }
 0x285   : > { %616 = vst.msk [vmem:[%s403_s5] sm:$0xf] %vm499_vm2, %v615_v36  ;;  %s1188_s24 = sshll.u32 %s1288_s12, 4  ;;  %s1189_s24 = int_to_ptr.vmem [resolvable:$false] %s1188_s24 }
 0x286   : > { %v612_v38 = vpop.f32.mrf.mxu0  ;;  %p1186_p2 = pnand %p1185_p13, %p1432_p5  ;;  %s1190_s3 = scalar_lea.vmem %s1189_s24, 128 }
 0x287   : > { %p1191_p6 = scmp.lt.s32.totalorder %s671_s21, %s1189_s24  ;;  %p1192_p12 = scmp.lt.s32.totalorder %s1190_s3, %s1184_s23 }
 0x288   : > { %p1187_p4 = pneg %p1186_p2 }
 0x289   : > { %p1193_p0 = por %p1192_p12, %p1191_p6 }
 0x28b   : > { %p1194_p3 = pnand %p1193_p0, %p1187_p4 }
 0x28d   : > { %1197 = shalt.err (!%p1194_p3)
}
 0x28e   : > { %s1198_s15 = scalar_lea.hbm %s1576_s11, 64  ;;  %s1202_s16 = scalar_lea.hbm %s1632_s8, 128 }
 0x28f   : > { %p1199_p10 = scmp.ne.s32.totalorder %s1576_s11, %s1198_s15  ;;  %p1203_p11 = scmp.lt.s32.totalorder %s1576_s11, %s1632_s8 }
 0x290   : > { %p1204_p1 = scmp.lt.s32.totalorder %s1202_s16, %s1198_s15 }
 0x291   : > { %p1200_p7 = pnand %p1199_p10, %p1432_p5 }
 0x292   : > { %p1205_p9 = por %p1204_p1, %p1203_p11 }
 0x293   : > { %p1201_p8 = pneg %p1200_p7 }
 0x295   : > { %p1206_p13 = pnand %p1205_p9, %p1201_p8 }
 0x297   : > { %1209 = shalt.err (!%p1206_p13)
}
 0x298   : > { %927 = dma.vmem_to_hbm [thread:$0]  (%p1432_p5), %s671_s21, 64, %s1576_s11, %s1520_s4   ;;  %v910_v39 = vpop.f32.mrf.mxu0 }
 0x299 PF: > { %s682_s20 = sand.u32 1, %s1256_s27   ;;  %p1658_p2 = scmp.ne.s32.totalorder %s1642_s14, 0 }
 0x29a   : > { %p1659_p4 = scmp.ge.s32.totalorder %s1276_s10, 2  ;;  %s683_s22 = scalar_lea.sflag [#allocation4], %s682_s20 }
 0x29c   : > { %p946_p6 = pnand %p1659_p4, %p1658_p2 }
 0x29e   : > { %p947_p12 = pneg %p946_p6 }
 0x2a0   : > { %1247 = dma.done.wait (%p947_p12), %s683_s22, 64  }
 0x2a1   : > { %1249 = vsyncadd (%p947_p12), %s683_s22, 4294967232  ;;  %s1660_s19 = sadd.s32 4294967294, %s1276_s10  }
 0x2a2   : > { %s691_s30 = sand.u32 1, %s1660_s19  }
 0x2a3   : > { %s692_s18 = scalar_lea.sflag [#allocation12], %s691_s30 }
 0x2a4   : > { %1251 = dma.done.wait (%p947_p12), %s692_s18, 128  }
 0x2a5   : > { %1253 = vsyncadd (%p947_p12), %s692_s18, 4294967168  ;;  %s30_s10 = sadd.s32 1, %s1276_s10   ;;  %s1661_s14 = sld [smem:[#allocation19_spill]] }
 0x2a6   : > { %p27_p5 = scmp.ge.s32.totalorder %s30_s10, 4   ;;  %s1662_s27 = smov %s1260_s28 }
 0x2a7   : > { %s1663_s28 = smov %s1264_s29  ;;  %s1664_s29 = smov %s1444_s25 }
 0x2a8   : > { %s1665_s30 = smov %s1272_s9  ;;  %29 = sbr.rel (!%p27_p5) target bundleno = 14 (0xe), region = 133 }
 0x2ab   : > { %s1666_s9 = smov %s1661_s14 }
 0x2ad   :  { %706 = vsyncpa [#allocation3], 1 }
 0x2ae   :  { %708 = vsyncpa [#allocation3 + $0x1], 1 }
 0x2af   :  { %709 = vsyncpa [#allocation6], 1 }
 0x2b0   :  { %710 = vsyncpa [#allocation9], 1 }
 0x2b1   :  { %711 = vsyncpa [#allocation4], 1 }
 0x2b2   :  { %713 = vsyncpa [#allocation4 + $0x1], 1 }
 0x2b3   :  { %714 = vsyncpa [#allocation12], 1 }
 0x2b4   :  { %716 = vsyncpa [#allocation12 + $0x1], 1 }

</bundles_post_ra>
